<compile_context>
chip_gen: v6e
topology: v6e:2x2x1
jax: 0.10.0
libtpu: 0.0.40
codegen_flags: <defaults>
</compile_context>

<pallas_src>
import functools

import jax
import jax.numpy as jnp
from jax.experimental import pallas as pl
from jax.experimental.pallas import tpu as pltpu

LN_EPS_VIT = 1e-6     # timm ViT LayerNorm eps
LN_EPS_HEAD = 1e-5    # nn.LayerNorm default eps in mlp_head
_NEG_INF = -1e30


def _round_up(x, m):
    return ((x + m - 1) // m) * m


# ---------------------------------------------------------------------------
# Hardware-aware sizing (VMEM limit + sequence tile)
# ---------------------------------------------------------------------------
def _vmem_capacity_bytes():
    try:
        return int(pltpu.get_tpu_info().vmem_capacity_bytes)
    except Exception:
        return 128 * 1024 * 1024          # v5e / v6e assumption if the query fails


_VMEM_CAP = _vmem_capacity_bytes()
# Never request the full physical VMEM (v7x only has 64 MiB/TC): keep ~25% headroom
# for compiler scratch / double buffers, cap at 96 MiB on 128-MiB parts (v5e/v6e).
_VMEM_LIMIT = max(32 * 1024 * 1024, min(96 * 1024 * 1024, (_VMEM_CAP * 3) // 4))


def _pick_seq_tile(n_tokens):
    # Big sequence tiles cut per-grid-step overhead and K/V DMA re-issues.
    # 256 on 128-MiB-VMEM parts (v5e/v6e); 128 on v7x (64 MiB) so the fused
    # attention+MLP working set stays within budget.
    if n_tokens < 128:
        return _round_up(n_tokens, 8)
    if _VMEM_CAP >= 100 * 1024 * 1024 and n_tokens >= 256:
        return 256
    return 128


def _block_params(dims_sem):
    return pltpu.CompilerParams(dimension_semantics=dims_sem,
                                vmem_limit_bytes=_VMEM_LIMIT)


def _const_spec(arr):
    # Full-array operand with a constant index_map: its DMA is issued once and not
    # re-fired across grid steps.  (At full AST-base sizes on v7x these are the
    # single-buffering candidates via pipeline_mode=pl.Buffered(1).)
    zeros = (0,) * arr.ndim
    return pl.BlockSpec(arr.shape, lambda *_: zeros)


def _layernorm(v, w, b, eps):
    mu = jnp.mean(v, axis=-1, keepdims=True)
    var = jnp.mean((v - mu) ** 2, axis=-1, keepdims=True)
    return (v - mu) * jax.lax.rsqrt(var + eps) * w + b


# ---------------------------------------------------------------------------
# Patch embedding: conv2d(1, D, 16x16, stride=(fstride,tstride)) as patches + matmul
# ---------------------------------------------------------------------------
def linear_kernel(x_ref, w_ref, b_ref, o_ref):
    o_ref[...] = (jnp.dot(x_ref[...], w_ref[...],
                          preferred_element_type=jnp.float32)
                  + b_ref[...]).astype(o_ref.dtype)


def patch_embed_matmul(patches, w, b, *, tile_m=1024):
    # patches: (M, K*K) bf16, w: (K*K, D) bf16, b: (1, D) f32  -> (M, D) bf16
    M, KK = patches.shape
    D = w.shape[1]
    tm = min(tile_m, _round_up(M, 8))
    m_pad = _round_up(M, tm)
    if m_pad != M:
        patches = jnp.pad(patches, ((0, m_pad - M), (0, 0)))
    out = pl.pallas_call(
        linear_kernel,
        out_shape=jax.ShapeDtypeStruct((m_pad, D), jnp.bfloat16),
        grid=(m_pad // tm,),
        in_specs=[pl.BlockSpec((tm, KK), lambda i: (i, 0)),
                  _const_spec(w), _const_spec(b)],
        out_specs=pl.BlockSpec((tm, D), lambda i: (i, 0)),
        compiler_params=_block_params(("parallel",)),
    )(patches, w, b)
    return out[:M]


def extract_patches(x_img, kernel, fstride, tstride):
    # x_img: (B, F, T).  Fused strided-window gather; per-patch features are in
    # (kh, kw) row-major order, matching a (D, 1, 16, 16) conv weight reshaped to
    # (K*K, D).
    B = x_img.shape[0]
    p = jax.lax.conv_general_dilated_patches(
        x_img[:, None, :, :], filter_shape=(kernel, kernel),
        window_strides=(fstride, tstride), padding="VALID")   # (B, K*K, f_dim, t_dim)
    _, kk, f_dim, t_dim = p.shape
    patches = p.reshape(B, kk, f_dim * t_dim).transpose(0, 2, 1)  # (B, P, K*K)
    return patches, f_dim, t_dim


# ---------------------------------------------------------------------------
# Encoder block kernels (pre-LN ViT block): 2 row-tiled pallas_calls per block
# ---------------------------------------------------------------------------
def qkv_kernel(x_ref, ln1w_ref, ln1b_ref, wqkv_ref, bqkv_ref,
               q_ref, k_ref, v_ref, *, scale, num_heads):
    D = x_ref.shape[-1]
    H = num_heads
    dh = D // H
    x = x_ref[0].astype(jnp.float32)                                   # (TQ, D)
    xn = _layernorm(x, ln1w_ref[...], ln1b_ref[...], LN_EPS_VIT)
    qkv = (jnp.dot(xn.astype(jnp.bfloat16), wqkv_ref[...],
                   preferred_element_type=jnp.float32) + bqkv_ref[...])  # (TQ, 3D)
    qf = qkv[:, 0 * D:1 * D] * scale                                   # pre-scaled q
    kT = qkv[:, 1 * D:2 * D].T                                         # (D, TQ) f32
    vf = qkv[:, 2 * D:3 * D]
    # Head split happens ONCE per token tile here (head-major outputs), so the
    # attention kernel never re-slices the full-sequence K/V per query tile.
    for h in range(H):
        sl = slice(h * dh, (h + 1) * dh)
        q_ref[0, h] = qf[:, sl].astype(q_ref.dtype)                    # (TQ, dh)
        k_ref[0, h] = kT[sl, :].astype(k_ref.dtype)                    # (dh, TQ) lane-dense seq
        v_ref[0, h] = vf[:, sl].astype(v_ref.dtype)                    # (TQ, dh)


def attn_mlp_kernel(q_ref, k_ref, v_ref, x_ref, bias_ref,
                    wproj_ref, bproj_ref, ln2w_ref, ln2b_ref,
                    w1_ref, b1_ref, w2_ref, b2_ref, o_ref):
    q3 = q_ref[0]                          # (H, TQ, dh) bf16, pre-scaled by dh**-0.5
    k3 = k_ref[0]                          # (H, dh, Np) bf16
    v3 = v_ref[0]                          # (H, Np, dh) bf16

    # Scores + masked softmax over padded keys (precomputed additive bias: 1 add,
    # instead of iota+compare+select per grid step).
    s = jnp.einsum("hqd,hdk->hqk", q3, k3,
                   preferred_element_type=jnp.float32)                 # (H, TQ, Np)
    s = s + bias_ref[...]
    m = jnp.max(s, axis=-1, keepdims=True)
    p = jnp.exp(s - m)
    p = p * pl.reciprocal(jnp.sum(p, axis=-1, keepdims=True), approx=True)

    o3 = jnp.einsum("hqk,hkd->hqd", p.astype(v3.dtype), v3,
                    preferred_element_type=jnp.float32)                # (H, TQ, dh)
    # Head-major out-projection: batched (H) matmul + head-sum; no concat / relayout.
    op = jnp.einsum("hqd,hdn->hqn", o3.astype(jnp.bfloat16), wproj_ref[...],
                    preferred_element_type=jnp.float32)                # (H, TQ, D)
    attn = jnp.sum(op, axis=0) + bproj_ref[...]

    y1 = x_ref[0].astype(jnp.float32) + attn                           # residual 1

    xn = _layernorm(y1, ln2w_ref[...], ln2b_ref[...], LN_EPS_VIT)
    h = (jnp.dot(xn.astype(jnp.bfloat16), w1_ref[...],
                 preferred_element_type=jnp.float32) + b1_ref[...])
    # TODO(synk): PyTorch/timm nn.GELU is exact erf-GELU; tanh approximation used here
    # (EUP-friendly), small numeric deviation vs the reference.
    h = jax.nn.gelu(h, approximate=True)
    y2 = (jnp.dot(h.astype(jnp.bfloat16), w2_ref[...],
                  preferred_element_type=jnp.float32) + b2_ref[...])
    o_ref[0] = (y1 + y2).astype(o_ref.dtype)                           # residual 2


def run_encoder_block(tok, key_bias, blk, *, num_heads, tq):
    B, n_pad, D = tok.shape
    H = num_heads
    dh = D // H
    n_tiles = n_pad // tq
    grid = (B, n_tiles)
    cp = _block_params(("parallel", "parallel"))

    row_spec = pl.BlockSpec((1, tq, D), lambda b, i: (b, i, 0))
    q_spec = pl.BlockSpec((1, H, tq, dh), lambda b, i: (b, 0, i, 0))
    kT_spec = pl.BlockSpec((1, H, dh, tq), lambda b, i: (b, 0, 0, i))
    v_spec = pl.BlockSpec((1, H, tq, dh), lambda b, i: (b, 0, i, 0))
    # K/V full-sequence blocks: index_map only depends on the batch axis, so their
    # DMA does not re-fire across sequence tiles.
    k_seq_spec = pl.BlockSpec((1, H, dh, n_pad), lambda b, i: (b, 0, 0, 0))
    v_seq_spec = pl.BlockSpec((1, H, n_pad, dh), lambda b, i: (b, 0, 0, 0))

    (ln1w, ln1b, wqkv, bqkv, wproj, bproj, ln2w, ln2b, w1, b1, w2, b2) = blk
    wproj3 = wproj.reshape(H, dh, D)     # head-major out-proj weight (free reshape)
    scale = float(dh) ** -0.5

    # 1) LN1 + fused QKV projection, head-major Q/K/V outputs.
    q, k, v = pl.pallas_call(
        functools.partial(qkv_kernel, scale=scale, num_heads=H),
        out_shape=(jax.ShapeDtypeStruct((B, H, n_pad, dh), jnp.bfloat16),
                   jax.ShapeDtypeStruct((B, H, dh, n_pad), jnp.bfloat16),
                   jax.ShapeDtypeStruct((B, H, n_pad, dh), jnp.bfloat16)),
        grid=grid,
        in_specs=[row_spec, _const_spec(ln1w), _const_spec(ln1b),
                  _const_spec(wqkv), _const_spec(bqkv)],
        out_specs=(q_spec, kT_spec, v_spec),
        compiler_params=cp,
    )(tok, ln1w, ln1b, wqkv, bqkv)

    # 2) Fused attention + out-proj + residual + LN2 + MLP + residual: one read+write
    #    of the residual stream per block, updated in place.
    tok = pl.pallas_call(
        attn_mlp_kernel,
        out_shape=jax.ShapeDtypeStruct((B, n_pad, D), jnp.bfloat16),
        grid=grid,
        in_specs=[q_spec, k_seq_spec, v_seq_spec, row_spec, _const_spec(key_bias),
                  _const_spec(wproj3), _const_spec(bproj),
                  _const_spec(ln2w), _const_spec(ln2b),
                  _const_spec(w1), _const_spec(b1),
                  _const_spec(w2), _const_spec(b2)],
        out_specs=row_spec,
        input_output_aliases={3: 0},      # residual stream updated in place
        compiler_params=cp,
    )(q, k, v, tok, key_bias, wproj3, bproj, ln2w, ln2b, w1, b1, w2, b2)
    return tok


# ---------------------------------------------------------------------------
# Final norm + distillation pooling ((cls + dist)/2) + mlp_head (LN + Linear)
# ---------------------------------------------------------------------------
def head_kernel(x_ref, nw_ref, nb_ref, lnw_ref, lnb_ref, hw_ref, hb_ref, o_ref):
    x = x_ref[...].astype(jnp.float32)                            # (B, 2, D): cls, dist
    xn = _layernorm(x, nw_ref[...], nb_ref[...], LN_EPS_VIT)      # self.v.norm
    pooled = (xn[:, 0, :] + xn[:, 1, :]) * 0.5                    # (x[:,0] + x[:,1]) / 2
    pn = _layernorm(pooled, lnw_ref[...], lnb_ref[...], LN_EPS_HEAD)
    o_ref[...] = (jnp.dot(pn.astype(jnp.bfloat16), hw_ref[...],
                          preferred_element_type=jnp.float32)
                  + hb_ref[...]).astype(o_ref.dtype)


def run_head(tok2, params):
    B = tok2.shape[0]
    L = params["head_w"].shape[1]
    return pl.pallas_call(
        head_kernel,
        out_shape=jax.ShapeDtypeStruct((B, L), jnp.float32),
    )(tok2, params["norm_w"], params["norm_b"],
      params["head_ln_w"], params["head_ln_b"],
      params["head_w"], params["head_b"])


# ---------------------------------------------------------------------------
# Full forward
# ---------------------------------------------------------------------------
def ast_forward(x, params, *, fstride, tstride, kernel_size, num_heads):
    B = x.shape[0]
    # x.unsqueeze(1).transpose(2,3): (B, T, F) -> (B, 1, F, T); channel dim squeezed.
    x_img = jnp.transpose(x, (0, 2, 1))                            # (B, F, T)
    patches, f_dim, t_dim = extract_patches(x_img, kernel_size, fstride, tstride)
    P = f_dim * t_dim
    D = params["proj_w"].shape[1]

    ptok = patch_embed_matmul(
        patches.reshape(B * P, -1).astype(jnp.bfloat16),
        params["proj_w"], params["proj_b"])
    ptok = ptok.reshape(B, P, D)                                   # stays bf16

    # cls/dist concat + pos_embed add + pad all in bf16 (no f32 round trips).
    cls = jnp.broadcast_to(params["cls_token"].astype(jnp.bfloat16), (B, 1, D))
    dist = jnp.broadcast_to(params["dist_token"].astype(jnp.bfloat16), (B, 1, D))
    tok = (jnp.concatenate([cls, dist, ptok], axis=1)
           + params["pos_embed"].astype(jnp.bfloat16))
    # pos_drop / attention / proj / MLP dropouts: identity at inference.

    # Pad N = P + 2 to a tile-friendly length; padded keys masked via additive bias.
    N = P + 2
    tq = _pick_seq_tile(N)
    n_pad = _round_up(N, tq)
    tok = jnp.pad(tok, ((0, 0), (0, n_pad - N), (0, 0)))

    key_bias = jnp.where(jnp.arange(n_pad) < N, 0.0, _NEG_INF)
    key_bias = key_bias.astype(jnp.float32).reshape(1, n_pad)

    for blk in params["blocks"]:
        tok = run_encoder_block(tok, key_bias, blk, num_heads=num_heads, tq=tq)

    # Only cls + dist tokens feed the head; slice before the pallas_call so the head
    # kernel never DMAs the full (B, N, D) sequence.
    return run_head(tok[:, :2, :], params)


# ---------------------------------------------------------------------------
# Deterministic synthetic parameters (bf16 matmul weights, f32 LN params / biases)
# ---------------------------------------------------------------------------
def init_params(key, *, embed_dim, depth, mlp_ratio, label_dim,
                num_patches, patch_area):
    D = embed_dim
    Dm = int(D * mlp_ratio)
    keys = list(jax.random.split(key, 8 + depth))
    ki = iter(keys)

    def nrm(k, shape, std=0.02, dtype=jnp.float32):
        return (jax.random.normal(k, shape, dtype=jnp.float32) * std).astype(dtype)

    p = {}
    p["proj_w"] = nrm(next(ki), (patch_area, D), dtype=jnp.bfloat16)  # conv w (K*K, D)
    p["proj_b"] = nrm(next(ki), (1, D))
    p["cls_token"] = nrm(next(ki), (1, 1, D))
    p["dist_token"] = nrm(next(ki), (1, 1, D))
    p["pos_embed"] = nrm(next(ki), (1, num_patches + 2, D))           # trunc_normal analogue

    blocks = []
    for _ in range(depth):
        kq, kp_, k1, k2 = jax.random.split(next(ki), 4)
        blk = (
            jnp.ones((1, D), jnp.float32), jnp.zeros((1, D), jnp.float32),   # ln1 w, b
            nrm(kq, (D, 3 * D), dtype=jnp.bfloat16),
            jnp.zeros((1, 3 * D), jnp.float32),                              # qkv
            nrm(kp_, (D, D), dtype=jnp.bfloat16),
            jnp.zeros((1, D), jnp.float32),                                  # attn proj
            jnp.ones((1, D), jnp.float32), jnp.zeros((1, D), jnp.float32),   # ln2 w, b
            nrm(k1, (D, Dm), dtype=jnp.bfloat16),
            jnp.zeros((1, Dm), jnp.float32),                                 # mlp fc1
            nrm(k2, (Dm, D), dtype=jnp.bfloat16),
            jnp.zeros((1, D), jnp.float32),                                  # mlp fc2
        )
        blocks.append(blk)
    p["blocks"] = blocks

    p["norm_w"] = jnp.ones((1, D), jnp.float32)            # self.v.norm
    p["norm_b"] = jnp.zeros((1, D), jnp.float32)
    p["head_ln_w"] = jnp.ones((1, D), jnp.float32)         # mlp_head LayerNorm
    p["head_ln_b"] = jnp.zeros((1, D), jnp.float32)
    p["head_w"] = nrm(next(ki), (D, label_dim), dtype=jnp.bfloat16)   # mlp_head Linear
    p["head_b"] = jnp.zeros((1, label_dim), jnp.float32)
    return p


if __name__ == "__main__":
    # Small shapes consistent with the module (16x16 kernel, stride 10x10 kept).
    B = 2
    input_fdim, input_tdim = 16, 36
    fstride = tstride = 10
    K = 16
    D = 32            # embedding dim (scaled-down ViT)
    depth = 2
    num_heads = 4
    mlp_ratio = 4.0
    label_dim = 8

    f_dim = (input_fdim - K) // fstride + 1
    t_dim = (input_tdim - K) // tstride + 1
    num_patches = f_dim * t_dim

    key = jax.random.PRNGKey(0)
    kx, kp = jax.random.split(key)
    x = jax.random.normal(kx, (B, input_tdim, input_fdim), dtype=jnp.float32)
    params = init_params(kp, embed_dim=D, depth=depth, mlp_ratio=mlp_ratio,
                         label_dim=label_dim, num_patches=num_patches,
                         patch_area=K * K)

    fwd = jax.jit(functools.partial(ast_forward, fstride=fstride, tstride=tstride,
                                    kernel_size=K, num_heads=num_heads))
    out = fwd(x, params)
    jax.block_until_ready(out)
    assert out.shape == (B, label_dim), out.shape
    assert bool(jnp.all(jnp.isfinite(out)))
    print("KERNEL_OK")
</pallas_src>

<mosaic_0001>
module attributes {stable_mosaic.version = 11 : i64} {
  func.func @linear_kernel(%arg0: i32, %arg1: memref<8x256xbf16, #tpu.memory_space<vmem>>, %arg2: memref<256x32xbf16, #tpu.memory_space<vmem>>, %arg3: memref<1x32xf32, #tpu.memory_space<vmem>>, %arg4: memref<8x32xbf16, #tpu.memory_space<vmem>>) attributes {dimension_semantics = [#tpu.dimension_semantics<parallel>], iteration_bounds = array<i64: 1>, scalar_prefetch = 0 : i64, scratch_operands = 0 : i64, tpu.core_type = #tpu.core_type<tc>, window_params = [{transform_indices = @transform_0, window_bounds = array<i64: 8, 256>}, {pipeline_mode = #tpu.pipeline_mode<synchronous>, transform_indices = @transform_1, window_bounds = array<i64: 256, 32>}, {pipeline_mode = #tpu.pipeline_mode<synchronous>, transform_indices = @transform_2, window_bounds = array<i64: 1, 32>}, {transform_indices = @transform_3, window_bounds = array<i64: 8, 32>}]} {
    %c0 = arith.constant 0 : index
    %c0_0 = arith.constant 0 : index
    %0 = vector.load %arg1[%c0, %c0_0] : memref<8x256xbf16, #tpu.memory_space<vmem>>, vector<8x256xbf16>
    %c0_1 = arith.constant 0 : index
    %c0_2 = arith.constant 0 : index
    %1 = vector.load %arg2[%c0_1, %c0_2] : memref<256x32xbf16, #tpu.memory_space<vmem>>, vector<256x32xbf16>
    %cst = arith.constant dense<0.000000e+00> : vector<8x32xf32>
    %2 = tpu.matmul %0, %1, %cst {dimension_numbers = #tpu.dot_dimension_numbers<[1], [0], [0], [1], [0, 0, 1, 1], [], []>} : vector<8x256xbf16>, vector<256x32xbf16>, vector<8x32xf32> -> vector<8x32xf32>
    %c0_3 = arith.constant 0 : index
    %c0_4 = arith.constant 0 : index
    %3 = vector.load %arg3[%c0_3, %c0_4] : memref<1x32xf32, #tpu.memory_space<vmem>>, vector<1x32xf32>
    %4 = vector.broadcast %3 : vector<1x32xf32> to vector<8x32xf32>
    %5 = arith.addf %2, %4 : vector<8x32xf32>
    %6 = arith.truncf %5 : vector<8x32xf32> to vector<8x32xbf16>
    %c0_5 = arith.constant 0 : index
    %c0_6 = arith.constant 0 : index
    %7 = vector.load %arg4[%c0_5, %c0_6] : memref<8x32xbf16, #tpu.memory_space<vmem>>, vector<8x32xbf16>
    tpu.vector_store %arg4[%c0_5, %c0_6], %6 {strides = array<i32>} : memref<8x32xbf16, #tpu.memory_space<vmem>>, vector<8x32xbf16>,
    return
  }
  func.func @transform_0(%arg0: i32) -> (i32, i32) {
    %c0_i32 = arith.constant 0 : i32
    %c0_i32_0 = arith.constant 0 : i32
    return %arg0, %c0_i32 : i32, i32
  }
  func.func @transform_1(%arg0: i32) -> (i32, i32) {
    %c0_i32 = arith.constant 0 : i32
    %c0_i32_0 = arith.constant 0 : i32
    %c0_i32_1 = arith.constant 0 : i32
    return %c0_i32, %c0_i32_0 : i32, i32
  }
  func.func @transform_2(%arg0: i32) -> (i32, i32) {
    %c0_i32 = arith.constant 0 : i32
    %c0_i32_0 = arith.constant 0 : i32
    %c0_i32_1 = arith.constant 0 : i32
    return %c0_i32, %c0_i32_0 : i32, i32
  }
  func.func @transform_3(%arg0: i32) -> (i32, i32) {
    %c0_i32 = arith.constant 0 : i32
    %c0_i32_0 = arith.constant 0 : i32
    return %arg0, %c0_i32 : i32, i32
  }
}

module attributes {stable_mosaic.version = 11 : i64} {
  func.func @qkv_kernel(%arg0: i32, %arg1: i32, %arg2: memref<1x8x32xbf16, #tpu.memory_space<vmem>>, %arg3: memref<1x32xf32, #tpu.memory_space<vmem>>, %arg4: memref<1x32xf32, #tpu.memory_space<vmem>>, %arg5: memref<32x96xbf16, #tpu.memory_space<vmem>>, %arg6: memref<1x96xf32, #tpu.memory_space<vmem>>, %arg7: memref<1x4x8x8xbf16, #tpu.memory_space<vmem>>, %arg8: memref<1x4x8x8xbf16, #tpu.memory_space<vmem>>, %arg9: memref<1x4x8x8xbf16, #tpu.memory_space<vmem>>) attributes {dimension_semantics = [#tpu.dimension_semantics<parallel>, #tpu.dimension_semantics<parallel>], iteration_bounds = array<i64: 2, 1>, scalar_prefetch = 0 : i64, scratch_operands = 0 : i64, tpu.core_type = #tpu.core_type<tc>, window_params = [{transform_indices = @transform_0, window_bounds = array<i64: 1, 8, 32>}, {pipeline_mode = #tpu.pipeline_mode<synchronous>, transform_indices = @transform_1, window_bounds = array<i64: 1, 32>}, {pipeline_mode = #tpu.pipeline_mode<synchronous>, transform_indices = @transform_2, window_bounds = array<i64: 1, 32>}, {pipeline_mode = #tpu.pipeline_mode<synchronous>, transform_indices = @transform_3, window_bounds = array<i64: 32, 96>}, {pipeline_mode = #tpu.pipeline_mode<synchronous>, transform_indices = @transform_4, window_bounds = array<i64: 1, 96>}, {transform_indices = @transform_5, window_bounds = array<i64: 1, 4, 8, 8>}, {transform_indices = @transform_6, window_bounds = array<i64: 1, 4, 8, 8>}, {transform_indices = @transform_7, window_bounds = array<i64: 1, 4, 8, 8>}]} {
    %c0 = arith.constant 0 : index
    %c0_0 = arith.constant 0 : index
    %c0_1 = arith.constant 0 : index
    %0 = vector.load %arg2[%c0, %c0_0, %c0_1] : memref<1x8x32xbf16, #tpu.memory_space<vmem>>, vector<1x8x32xbf16>
    %1 = vector.shape_cast %0 : vector<1x8x32xbf16> to vector<8x32xbf16>
    %2 = arith.extf %1 : vector<8x32xbf16> to vector<8x32xf32>
    %c0_2 = arith.constant 0 : index
    %c0_3 = arith.constant 0 : index
    %3 = vector.load %arg3[%c0_2, %c0_3] : memref<1x32xf32, #tpu.memory_space<vmem>>, vector<1x32xf32>
    %c0_4 = arith.constant 0 : index
    %c0_5 = arith.constant 0 : index
    %4 = vector.load %arg4[%c0_4, %c0_5] : memref<1x32xf32, #tpu.memory_space<vmem>>, vector<1x32xf32>
    %cst = arith.constant dense<0.000000e+00> : vector<8xf32>
    %5 = vector.multi_reduction <add>, %2, %cst [1] : vector<8x32xf32> to vector<8xf32>
    %6 = vector.shape_cast %5 : vector<8xf32> to vector<8x1xf32>
    %cst_6 = arith.constant 3.200000e+01 : f32
    %7 = vector.broadcast %cst_6 : f32 to vector<8x1xf32>
    %8 = arith.divf %6, %7 : vector<8x1xf32>
    %9 = vector.broadcast %8 : vector<8x1xf32> to vector<8x32xf32>
    %10 = arith.subf %2, %9 : vector<8x32xf32>
    %11 = arith.mulf %10, %10 : vector<8x32xf32>
    %cst_7 = arith.constant dense<0.000000e+00> : vector<8xf32>
    %12 = vector.multi_reduction <add>, %11, %cst_7 [1] : vector<8x32xf32> to vector<8xf32>
    %13 = vector.shape_cast %12 : vector<8xf32> to vector<8x1xf32>
    %cst_8 = arith.constant 3.200000e+01 : f32
    %14 = vector.broadcast %cst_8 : f32 to vector<8x1xf32>
    %15 = arith.divf %13, %14 : vector<8x1xf32>
    %16 = vector.broadcast %8 : vector<8x1xf32> to vector<8x32xf32>
    %17 = arith.subf %2, %16 : vector<8x32xf32>
    %cst_9 = arith.constant 9.99999997E-7 : f32
    %18 = vector.broadcast %cst_9 : f32 to vector<8x1xf32>
    %19 = arith.addf %15, %18 : vector<8x1xf32>
    %20 = math.rsqrt %19 : vector<8x1xf32>
    %21 = vector.broadcast %20 : vector<8x1xf32> to vector<8x32xf32>
    %22 = arith.mulf %17, %21 : vector<8x32xf32>
    %23 = vector.broadcast %3 : vector<1x32xf32> to vector<8x32xf32>
    %24 = arith.mulf %22, %23 : vector<8x32xf32>
    %25 = vector.broadcast %4 : vector<1x32xf32> to vector<8x32xf32>
    %26 = arith.addf %24, %25 : vector<8x32xf32>
    %27 = arith.truncf %26 : vector<8x32xf32> to vector<8x32xbf16>
    %c0_10 = arith.constant 0 : index
    %c0_11 = arith.constant 0 : index
    %28 = vector.load %arg5[%c0_10, %c0_11] : memref<32x96xbf16, #tpu.memory_space<vmem>>, vector<32x96xbf16>
    %cst_12 = arith.constant dense<0.000000e+00> : vector<8x96xf32>
    %29 = tpu.matmul %27, %28, %cst_12 {dimension_numbers = #tpu.dot_dimension_numbers<[1], [0], [0], [1], [0, 0, 1, 1], [], []>} : vector<8x32xbf16>, vector<32x96xbf16>, vector<8x96xf32> -> vector<8x96xf32>
    %c0_13 = arith.constant 0 : index
    %c0_14 = arith.constant 0 : index
    %30 = vector.load %arg6[%c0_13, %c0_14] : memref<1x96xf32, #tpu.memory_space<vmem>>, vector<1x96xf32>
    %31 = vector.broadcast %30 : vector<1x96xf32> to vector<8x96xf32>
    %32 = arith.addf %29, %31 : vector<8x96xf32>
    %33 = vector.extract_strided_slice %32 {offsets = [0, 0], sizes = [8, 32], strides = [1, 1]} : vector<8x96xf32> to vector<8x32xf32>
    %cst_15 = arith.constant 0.353553385 : f32
    %34 = vector.broadcast %cst_15 : f32 to vector<8x32xf32>
    %35 = arith.mulf %33, %34 : vector<8x32xf32>
    %36 = vector.extract_strided_slice %32 {offsets = [0, 32], sizes = [8, 32], strides = [1, 1]} : vector<8x96xf32> to vector<8x32xf32>
    %37 = tpu.transpose %36, [1, 0] : vector<8x32xf32> -> vector<32x8xf32>
    %38 = vector.extract_strided_slice %32 {offsets = [0, 64], sizes = [8, 32], strides = [1, 1]} : vector<8x96xf32> to vector<8x32xf32>
    %39 = vector.extract_strided_slice %35 {offsets = [0, 0], sizes = [8, 8], strides = [1, 1]} : vector<8x32xf32> to vector<8x8xf32>
    %40 = arith.truncf %39 : vector<8x8xf32> to vector<8x8xbf16>
    %c0_16 = arith.constant 0 : index
    %c0_17 = arith.constant 0 : index
    %c0_18 = arith.constant 0 : index
    %c0_19 = arith.constant 0 : index
    %41 = vector.load %arg7[%c0_16, %c0_17, %c0_18, %c0_19] : memref<1x4x8x8xbf16, #tpu.memory_space<vmem>>, vector<1x1x8x8xbf16>
    %42 = vector.shape_cast %41 : vector<1x1x8x8xbf16> to vector<8x8xbf16>
    %43 = vector.shape_cast %40 : vector<8x8xbf16> to vector<1x1x8x8xbf16>
    tpu.vector_store %arg7[%c0_16, %c0_17, %c0_18, %c0_19], %43 {strides = array<i32>} : memref<1x4x8x8xbf16, #tpu.memory_space<vmem>>, vector<1x1x8x8xbf16>,
    %44 = vector.extract_strided_slice %37 {offsets = [0, 0], sizes = [8, 8], strides = [1, 1]} : vector<32x8xf32> to vector<8x8xf32>
    %45 = arith.truncf %44 : vector<8x8xf32> to vector<8x8xbf16>
    %c0_20 = arith.constant 0 : index
    %c0_21 = arith.constant 0 : index
    %c0_22 = arith.constant 0 : index
    %c0_23 = arith.constant 0 : index
    %46 = vector.load %arg8[%c0_20, %c0_21, %c0_22, %c0_23] : memref<1x4x8x8xbf16, #tpu.memory_space<vmem>>, vector<1x1x8x8xbf16>
    %47 = vector.shape_cast %46 : vector<1x1x8x8xbf16> to vector<8x8xbf16>
    %48 = vector.shape_cast %45 : vector<8x8xbf16> to vector<1x1x8x8xbf16>
    tpu.vector_store %arg8[%c0_20, %c0_21, %c0_22, %c0_23], %48 {strides = array<i32>} : memref<1x4x8x8xbf16, #tpu.memory_space<vmem>>, vector<1x1x8x8xbf16>,
    %49 = vector.extract_strided_slice %38 {offsets = [0, 0], sizes = [8, 8], strides = [1, 1]} : vector<8x32xf32> to vector<8x8xf32>
    %50 = arith.truncf %49 : vector<8x8xf32> to vector<8x8xbf16>
    %c0_24 = arith.constant 0 : index
    %c0_25 = arith.constant 0 : index
    %c0_26 = arith.constant 0 : index
    %c0_27 = arith.constant 0 : index
    %51 = vector.load %arg9[%c0_24, %c0_25, %c0_26, %c0_27] : memref<1x4x8x8xbf16, #tpu.memory_space<vmem>>, vector<1x1x8x8xbf16>
    %52 = vector.shape_cast %51 : vector<1x1x8x8xbf16> to vector<8x8xbf16>
    %53 = vector.shape_cast %50 : vector<8x8xbf16> to vector<1x1x8x8xbf16>
    tpu.vector_store %arg9[%c0_24, %c0_25, %c0_26, %c0_27], %53 {strides = array<i32>} : memref<1x4x8x8xbf16, #tpu.memory_space<vmem>>, vector<1x1x8x8xbf16>,
    %54 = vector.extract_strided_slice %35 {offsets = [0, 8], sizes = [8, 8], strides = [1, 1]} : vector<8x32xf32> to vector<8x8xf32>
    %55 = arith.truncf %54 : vector<8x8xf32> to vector<8x8xbf16>
    %c0_28 = arith.constant 0 : index
    %c1 = arith.constant 1 : index
    %c0_29 = arith.constant 0 : index
    %c0_30 = arith.constant 0 : index
    %56 = vector.load %arg7[%c0_28, %c1, %c0_29, %c0_30] : memref<1x4x8x8xbf16, #tpu.memory_space<vmem>>, vector<1x1x8x8xbf16>
    %57 = vector.shape_cast %56 : vector<1x1x8x8xbf16> to vector<8x8xbf16>
    %58 = vector.shape_cast %55 : vector<8x8xbf16> to vector<1x1x8x8xbf16>
    tpu.vector_store %arg7[%c0_28, %c1, %c0_29, %c0_30], %58 {strides = array<i32>} : memref<1x4x8x8xbf16, #tpu.memory_space<vmem>>, vector<1x1x8x8xbf16>,
    %59 = vector.extract_strided_slice %37 {offsets = [8, 0], sizes = [8, 8], strides = [1, 1]} : vector<32x8xf32> to vector<8x8xf32>
    %60 = arith.truncf %59 : vector<8x8xf32> to vector<8x8xbf16>
    %c0_31 = arith.constant 0 : index
    %c1_32 = arith.constant 1 : index
    %c0_33 = arith.constant 0 : index
    %c0_34 = arith.constant 0 : index
    %61 = vector.load %arg8[%c0_31, %c1_32, %c0_33, %c0_34] : memref<1x4x8x8xbf16, #tpu.memory_space<vmem>>, vector<1x1x8x8xbf16>
    %62 = vector.shape_cast %61 : vector<1x1x8x8xbf16> to vector<8x8xbf16>
    %63 = vector.shape_cast %60 : vector<8x8xbf16> to vector<1x1x8x8xbf16>
    tpu.vector_store %arg8[%c0_31, %c1_32, %c0_33, %c0_34], %63 {strides = array<i32>} : memref<1x4x8x8xbf16, #tpu.memory_space<vmem>>, vector<1x1x8x8xbf16>,
    %64 = vector.extract_strided_slice %38 {offsets = [0, 8], sizes = [8, 8], strides = [1, 1]} : vector<8x32xf32> to vector<8x8xf32>
    %65 = arith.truncf %64 : vector<8x8xf32> to vector<8x8xbf16>
    %c0_35 = arith.constant 0 : index
    %c1_36 = arith.constant 1 : index
    %c0_37 = arith.constant 0 : index
    %c0_38 = arith.constant 0 : index
    %66 = vector.load %arg9[%c0_35, %c1_36, %c0_37, %c0_38] : memref<1x4x8x8xbf16, #tpu.memory_space<vmem>>, vector<1x1x8x8xbf16>
    %67 = vector.shape_cast %66 : vector<1x1x8x8xbf16> to vector<8x8xbf16>
    %68 = vector.shape_cast %65 : vector<8x8xbf16> to vector<1x1x8x8xbf16>
    tpu.vector_store %arg9[%c0_35, %c1_36, %c0_37, %c0_38], %68 {strides = array<i32>} : memref<1x4x8x8xbf16, #tpu.memory_space<vmem>>, vector<1x1x8x8xbf16>,
    %69 = vector.extract_strided_slice %35 {offsets = [0, 16], sizes = [8, 8], strides = [1, 1]} : vector<8x32xf32> to vector<8x8xf32>
    %70 = arith.truncf %69 : vector<8x8xf32> to vector<8x8xbf16>
    %c0_39 = arith.constant 0 : index
    %c2 = arith.constant 2 : index
    %c0_40 = arith.constant 0 : index
    %c0_41 = arith.constant 0 : index
    %71 = vector.load %arg7[%c0_39, %c2, %c0_40, %c0_41] : memref<1x4x8x8xbf16, #tpu.memory_space<vmem>>, vector<1x1x8x8xbf16>
    %72 = vector.shape_cast %71 : vector<1x1x8x8xbf16> to vector<8x8xbf16>
    %73 = vector.shape_cast %70 : vector<8x8xbf16> to vector<1x1x8x8xbf16>
    tpu.vector_store %arg7[%c0_39, %c2, %c0_40, %c0_41], %73 {strides = array<i32>} : memref<1x4x8x8xbf16, #tpu.memory_space<vmem>>, vector<1x1x8x8xbf16>,
    %74 = vector.extract_strided_slice %37 {offsets = [16, 0], sizes = [8, 8], strides = [1, 1]} : vector<32x8xf32> to vector<8x8xf32>
    %75 = arith.truncf %74 : vector<8x8xf32> to vector<8x8xbf16>
    %c0_42 = arith.constant 0 : index
    %c2_43 = arith.constant 2 : index
    %c0_44 = arith.constant 0 : index
    %c0_45 = arith.constant 0 : index
    %76 = vector.load %arg8[%c0_42, %c2_43, %c0_44, %c0_45] : memref<1x4x8x8xbf16, #tpu.memory_space<vmem>>, vector<1x1x8x8xbf16>
    %77 = vector.shape_cast %76 : vector<1x1x8x8xbf16> to vector<8x8xbf16>
    %78 = vector.shape_cast %75 : vector<8x8xbf16> to vector<1x1x8x8xbf16>
    tpu.vector_store %arg8[%c0_42, %c2_43, %c0_44, %c0_45], %78 {strides = array<i32>} : memref<1x4x8x8xbf16, #tpu.memory_space<vmem>>, vector<1x1x8x8xbf16>,
    %79 = vector.extract_strided_slice %38 {offsets = [0, 16], sizes = [8, 8], strides = [1, 1]} : vector<8x32xf32> to vector<8x8xf32>
    %80 = arith.truncf %79 : vector<8x8xf32> to vector<8x8xbf16>
    %c0_46 = arith.constant 0 : index
    %c2_47 = arith.constant 2 : index
    %c0_48 = arith.constant 0 : index
    %c0_49 = arith.constant 0 : index
    %81 = vector.load %arg9[%c0_46, %c2_47, %c0_48, %c0_49] : memref<1x4x8x8xbf16, #tpu.memory_space<vmem>>, vector<1x1x8x8xbf16>
    %82 = vector.shape_cast %81 : vector<1x1x8x8xbf16> to vector<8x8xbf16>
    %83 = vector.shape_cast %80 : vector<8x8xbf16> to vector<1x1x8x8xbf16>
    tpu.vector_store %arg9[%c0_46, %c2_47, %c0_48, %c0_49], %83 {strides = array<i32>} : memref<1x4x8x8xbf16, #tpu.memory_space<vmem>>, vector<1x1x8x8xbf16>,
    %84 = vector.extract_strided_slice %35 {offsets = [0, 24], sizes = [8, 8], strides = [1, 1]} : vector<8x32xf32> to vector<8x8xf32>
    %85 = arith.truncf %84 : vector<8x8xf32> to vector<8x8xbf16>
    %c0_50 = arith.constant 0 : index
    %c3 = arith.constant 3 : index
    %c0_51 = arith.constant 0 : index
    %c0_52 = arith.constant 0 : index
    %86 = vector.load %arg7[%c0_50, %c3, %c0_51, %c0_52] : memref<1x4x8x8xbf16, #tpu.memory_space<vmem>>, vector<1x1x8x8xbf16>
    %87 = vector.shape_cast %86 : vector<1x1x8x8xbf16> to vector<8x8xbf16>
    %88 = vector.shape_cast %85 : vector<8x8xbf16> to vector<1x1x8x8xbf16>
    tpu.vector_store %arg7[%c0_50, %c3, %c0_51, %c0_52], %88 {strides = array<i32>} : memref<1x4x8x8xbf16, #tpu.memory_space<vmem>>, vector<1x1x8x8xbf16>,
    %89 = vector.extract_strided_slice %37 {offsets = [24, 0], sizes = [8, 8], strides = [1, 1]} : vector<32x8xf32> to vector<8x8xf32>
    %90 = arith.truncf %89 : vector<8x8xf32> to vector<8x8xbf16>
    %c0_53 = arith.constant 0 : index
    %c3_54 = arith.constant 3 : index
    %c0_55 = arith.constant 0 : index
    %c0_56 = arith.constant 0 : index
    %91 = vector.load %arg8[%c0_53, %c3_54, %c0_55, %c0_56] : memref<1x4x8x8xbf16, #tpu.memory_space<vmem>>, vector<1x1x8x8xbf16>
    %92 = vector.shape_cast %91 : vector<1x1x8x8xbf16> to vector<8x8xbf16>
    %93 = vector.shape_cast %90 : vector<8x8xbf16> to vector<1x1x8x8xbf16>
    tpu.vector_store %arg8[%c0_53, %c3_54, %c0_55, %c0_56], %93 {strides = array<i32>} : memref<1x4x8x8xbf16, #tpu.memory_space<vmem>>, vector<1x1x8x8xbf16>,
    %94 = vector.extract_strided_slice %38 {offsets = [0, 24], sizes = [8, 8], strides = [1, 1]} : vector<8x32xf32> to vector<8x8xf32>
    %95 = arith.truncf %94 : vector<8x8xf32> to vector<8x8xbf16>
    %c0_57 = arith.constant 0 : index
    %c3_58 = arith.constant 3 : index
    %c0_59 = arith.constant 0 : index
    %c0_60 = arith.constant 0 : index
    %96 = vector.load %arg9[%c0_57, %c3_58, %c0_59, %c0_60] : memref<1x4x8x8xbf16, #tpu.memory_space<vmem>>, vector<1x1x8x8xbf16>
    %97 = vector.shape_cast %96 : vector<1x1x8x8xbf16> to vector<8x8xbf16>
    %98 = vector.shape_cast %95 : vector<8x8xbf16> to vector<1x1x8x8xbf16>
    tpu.vector_store %arg9[%c0_57, %c3_58, %c0_59, %c0_60], %98 {strides = array<i32>} : memref<1x4x8x8xbf16, #tpu.memory_space<vmem>>, vector<1x1x8x8xbf16>,
    return
  }
  func.func @transform_0(%arg0: i32, %arg1: i32) -> (i32, i32, i32) {
    %c0_i32 = arith.constant 0 : i32
    %c0_i32_0 = arith.constant 0 : i32
    return %arg0, %arg1, %c0_i32 : i32, i32, i32
  }
  func.func @transform_1(%arg0: i32, %arg1: i32) -> (i32, i32) {
    %c0_i32 = arith.constant 0 : i32
    %c0_i32_0 = arith.constant 0 : i32
    %c0_i32_1 = arith.constant 0 : i32
    return %c0_i32, %c0_i32_0 : i32, i32
  }
  func.func @transform_2(%arg0: i32, %arg1: i32) -> (i32, i32) {
    %c0_i32 = arith.constant 0 : i32
    %c0_i32_0 = arith.constant 0 : i32
    %c0_i32_1 = arith.constant 0 : i32
    return %c0_i32, %c0_i32_0 : i32, i32
  }
  func.func @transform_3(%arg0: i32, %arg1: i32) -> (i32, i32) {
    %c0_i32 = arith.constant 0 : i32
    %c0_i32_0 = arith.constant 0 : i32
    %c0_i32_1 = arith.constant 0 : i32
    return %c0_i32, %c0_i32_0 : i32, i32
  }
  func.func @transform_4(%arg0: i32, %arg1: i32) -> (i32, i32) {
    %c0_i32 = arith.constant 0 : i32
    %c0_i32_0 = arith.constant 0 : i32
    %c0_i32_1 = arith.constant 0 : i32
    return %c0_i32, %c0_i32_0 : i32, i32
  }
  func.func @transform_5(%arg0: i32, %arg1: i32) -> (i32, i32, i32, i32) {
    %c0_i32 = arith.constant 0 : i32
    %c0_i32_0 = arith.constant 0 : i32
    %c0_i32_1 = arith.constant 0 : i32
    return %arg0, %c0_i32, %arg1, %c0_i32_0 : i32, i32, i32, i32
  }
  func.func @transform_6(%arg0: i32, %arg1: i32) -> (i32, i32, i32, i32) {
    %c0_i32 = arith.constant 0 : i32
    %c0_i32_0 = arith.constant 0 : i32
    %c0_i32_1 = arith.constant 0 : i32
    return %arg0, %c0_i32, %c0_i32_0, %arg1 : i32, i32, i32, i32
  }
  func.func @transform_7(%arg0: i32, %arg1: i32) -> (i32, i32, i32, i32) {
    %c0_i32 = arith.constant 0 : i32
    %c0_i32_0 = arith.constant 0 : i32
    %c0_i32_1 = arith.constant 0 : i32
    return %arg0, %c0_i32, %arg1, %c0_i32_0 : i32, i32, i32, i32
  }
}

module attributes {stable_mosaic.version = 11 : i64} {
  func.func @attn_mlp_kernel(%arg0: i32, %arg1: i32, %arg2: memref<1x4x8x8xbf16, #tpu.memory_space<vmem>>, %arg3: memref<1x4x8x8xbf16, #tpu.memory_space<vmem>>, %arg4: memref<1x4x8x8xbf16, #tpu.memory_space<vmem>>, %arg5: memref<1x8x32xbf16, #tpu.memory_space<vmem>>, %arg6: memref<1x8xf32, #tpu.memory_space<vmem>>, %arg7: memref<4x8x32xbf16, #tpu.memory_space<vmem>>, %arg8: memref<1x32xf32, #tpu.memory_space<vmem>>, %arg9: memref<1x32xf32, #tpu.memory_space<vmem>>, %arg10: memref<1x32xf32, #tpu.memory_space<vmem>>, %arg11: memref<32x128xbf16, #tpu.memory_space<vmem>>, %arg12: memref<1x128xf32, #tpu.memory_space<vmem>>, %arg13: memref<128x32xbf16, #tpu.memory_space<vmem>>, %arg14: memref<1x32xf32, #tpu.memory_space<vmem>>, %arg15: memref<1x8x32xbf16, #tpu.memory_space<vmem>>) attributes {dimension_semantics = [#tpu.dimension_semantics<parallel>, #tpu.dimension_semantics<parallel>], iteration_bounds = array<i64: 2, 1>, scalar_prefetch = 0 : i64, scratch_operands = 0 : i64, tpu.core_type = #tpu.core_type<tc>, window_params = [{transform_indices = @transform_0, window_bounds = array<i64: 1, 4, 8, 8>}, {transform_indices = @transform_1, window_bounds = array<i64: 1, 4, 8, 8>}, {transform_indices = @transform_2, window_bounds = array<i64: 1, 4, 8, 8>}, {transform_indices = @transform_3, window_bounds = array<i64: 1, 8, 32>}, {pipeline_mode = #tpu.pipeline_mode<synchronous>, transform_indices = @transform_4, window_bounds = array<i64: 1, 8>}, {pipeline_mode = #tpu.pipeline_mode<synchronous>, transform_indices = @transform_5, window_bounds = array<i64: 4, 8, 32>}, {pipeline_mode = #tpu.pipeline_mode<synchronous>, transform_indices = @transform_6, window_bounds = array<i64: 1, 32>}, {pipeline_mode = #tpu.pipeline_mode<synchronous>, transform_indices = @transform_7, window_bounds = array<i64: 1, 32>}, {pipeline_mode = #tpu.pipeline_mode<synchronous>, transform_indices = @transform_8, window_bounds = array<i64: 1, 32>}, {pipeline_mode = #tpu.pipeline_mode<synchronous>, transform_indices = @transform_9, window_bounds = array<i64: 32, 128>}, {pipeline_mode = #tpu.pipeline_mode<synchronous>, transform_indices = @transform_10, window_bounds = array<i64: 1, 128>}, {pipeline_mode = #tpu.pipeline_mode<synchronous>, transform_indices = @transform_11, window_bounds = array<i64: 128, 32>}, {pipeline_mode = #tpu.pipeline_mode<synchronous>, transform_indices = @transform_12, window_bounds = array<i64: 1, 32>}, {transform_indices = @transform_13, window_bounds = array<i64: 1, 8, 32>}]} {
    %c0 = arith.constant 0 : index
    %c0_0 = arith.constant 0 : index
    %c0_1 = arith.constant 0 : index
    %c0_2 = arith.constant 0 : index
    %0 = vector.load %arg2[%c0, %c0_0, %c0_1, %c0_2] : memref<1x4x8x8xbf16, #tpu.memory_space<vmem>>, vector<1x4x8x8xbf16>
    %1 = vector.shape_cast %0 : vector<1x4x8x8xbf16> to vector<4x8x8xbf16>
    %c0_3 = arith.constant 0 : index
    %c0_4 = arith.constant 0 : index
    %c0_5 = arith.constant 0 : index
    %c0_6 = arith.constant 0 : index
    %2 = vector.load %arg3[%c0_3, %c0_4, %c0_5, %c0_6] : memref<1x4x8x8xbf16, #tpu.memory_space<vmem>>, vector<1x4x8x8xbf16>
    %3 = vector.shape_cast %2 : vector<1x4x8x8xbf16> to vector<4x8x8xbf16>
    %c0_7 = arith.constant 0 : index
    %c0_8 = arith.constant 0 : index
    %c0_9 = arith.constant 0 : index
    %c0_10 = arith.constant 0 : index
    %4 = vector.load %arg4[%c0_7, %c0_8, %c0_9, %c0_10] : memref<1x4x8x8xbf16, #tpu.memory_space<vmem>>, vector<1x4x8x8xbf16>
    %5 = vector.shape_cast %4 : vector<1x4x8x8xbf16> to vector<4x8x8xbf16>
    "tpu.trace_start"() <{level = 10 : i32, message = "hqd,hdk->hqk"}> : () -> ()
    %cst = arith.constant dense<0.000000e+00> : vector<4x8x8xf32>
    %6 = tpu.matmul %1, %3, %cst {dimension_numbers = #tpu.dot_dimension_numbers<[2], [1], [1], [2], [0, 0, 0, 1, 1, 2], [0], [0]>} : vector<4x8x8xbf16>, vector<4x8x8xbf16>, vector<4x8x8xf32> -> vector<4x8x8xf32>
    "tpu.trace_stop"() : () -> ()
    %c0_11 = arith.constant 0 : index
    %c0_12 = arith.constant 0 : index
    %7 = vector.load %arg6[%c0_11, %c0_12] : memref<1x8xf32, #tpu.memory_space<vmem>>, vector<1x8xf32>
    %8 = vector.shape_cast %7 : vector<1x8xf32> to vector<1x1x8xf32>
    %9 = vector.broadcast %8 : vector<1x1x8xf32> to vector<4x8x8xf32>
    %10 = arith.addf %6, %9 : vector<4x8x8xf32>
    %cst_13 = arith.constant dense<0xFF800000> : vector<4x8xf32>
    %11 = vector.multi_reduction <maximumf>, %10, %cst_13 [2] : vector<4x8x8xf32> to vector<4x8xf32>
    %12 = vector.shape_cast %11 : vector<4x8xf32> to vector<4x8x1xf32>
    %13 = vector.broadcast %12 : vector<4x8x1xf32> to vector<4x8x8xf32>
    %14 = arith.subf %10, %13 : vector<4x8x8xf32>
    %15 = math.exp %14 : vector<4x8x8xf32>
    %cst_14 = arith.constant dense<0.000000e+00> : vector<4x8xf32>
    %16 = vector.multi_reduction <add>, %15, %cst_14 [2] : vector<4x8x8xf32> to vector<4x8xf32>
    %17 = vector.shape_cast %16 : vector<4x8xf32> to vector<4x8x1xf32>
    %18 = tpu.reciprocal %17 {approx = true} : vector<4x8x1xf32> -> vector<4x8x1xf32>
    %19 = vector.broadcast %18 : vector<4x8x1xf32> to vector<4x8x8xf32>
    %20 = arith.mulf %15, %19 : vector<4x8x8xf32>
    %21 = arith.truncf %20 : vector<4x8x8xf32> to vector<4x8x8xbf16>
    "tpu.trace_start"() <{level = 10 : i32, message = "hqk,hkd->hqd"}> : () -> ()
    %cst_15 = arith.constant dense<0.000000e+00> : vector<4x8x8xf32>
    %22 = tpu.matmul %21, %5, %cst_15 {dimension_numbers = #tpu.dot_dimension_numbers<[2], [1], [1], [2], [0, 0, 0, 1, 1, 2], [0], [0]>} : vector<4x8x8xbf16>, vector<4x8x8xbf16>, vector<4x8x8xf32> -> vector<4x8x8xf32>
    "tpu.trace_stop"() : () -> ()
    %23 = arith.truncf %22 : vector<4x8x8xf32> to vector<4x8x8xbf16>
    %c0_16 = arith.constant 0 : index
    %c0_17 = arith.constant 0 : index
    %c0_18 = arith.constant 0 : index
    %24 = vector.load %arg7[%c0_16, %c0_17, %c0_18] : memref<4x8x32xbf16, #tpu.memory_space<vmem>>, vector<4x8x32xbf16>
    "tpu.trace_start"() <{level = 10 : i32, message = "hqd,hdn->hqn"}> : () -> ()
    %cst_19 = arith.constant dense<0.000000e+00> : vector<4x8x32xf32>
    %25 = tpu.matmul %23, %24, %cst_19 {dimension_numbers = #tpu.dot_dimension_numbers<[2], [1], [1], [2], [0, 0, 0, 1, 1, 2], [0], [0]>} : vector<4x8x8xbf16>, vector<4x8x32xbf16>, vector<4x8x32xf32> -> vector<4x8x32xf32>
    "tpu.trace_stop"() : () -> ()
    %cst_20 = arith.constant dense<0.000000e+00> : vector<8x32xf32>
    %26 = vector.multi_reduction <add>, %25, %cst_20 [0] : vector<4x8x32xf32> to vector<8x32xf32>
    %c0_21 = arith.constant 0 : index
    %c0_22 = arith.constant 0 : index
    %27 = vector.load %arg8[%c0_21, %c0_22] : memref<1x32xf32, #tpu.memory_space<vmem>>, vector<1x32xf32>
    %28 = vector.broadcast %27 : vector<1x32xf32> to vector<8x32xf32>
    %29 = arith.addf %26, %28 : vector<8x32xf32>
    %c0_23 = arith.constant 0 : index
    %c0_24 = arith.constant 0 : index
    %c0_25 = arith.constant 0 : index
    %30 = vector.load %arg5[%c0_23, %c0_24, %c0_25] : memref<1x8x32xbf16, #tpu.memory_space<vmem>>, vector<1x8x32xbf16>
    %31 = vector.shape_cast %30 : vector<1x8x32xbf16> to vector<8x32xbf16>
    %32 = arith.extf %31 : vector<8x32xbf16> to vector<8x32xf32>
    %33 = arith.addf %32, %29 : vector<8x32xf32>
    %c0_26 = arith.constant 0 : index
    %c0_27 = arith.constant 0 : index
    %34 = vector.load %arg9[%c0_26, %c0_27] : memref<1x32xf32, #tpu.memory_space<vmem>>, vector<1x32xf32>
    %c0_28 = arith.constant 0 : index
    %c0_29 = arith.constant 0 : index
    %35 = vector.load %arg10[%c0_28, %c0_29] : memref<1x32xf32, #tpu.memory_space<vmem>>, vector<1x32xf32>
    %cst_30 = arith.constant dense<0.000000e+00> : vector<8xf32>
    %36 = vector.multi_reduction <add>, %33, %cst_30 [1] : vector<8x32xf32> to vector<8xf32>
    %37 = vector.shape_cast %36 : vector<8xf32> to vector<8x1xf32>
    %cst_31 = arith.constant 3.200000e+01 : f32
    %38 = vector.broadcast %cst_31 : f32 to vector<8x1xf32>
    %39 = arith.divf %37, %38 : vector<8x1xf32>
    %40 = vector.broadcast %39 : vector<8x1xf32> to vector<8x32xf32>
    %41 = arith.subf %33, %40 : vector<8x32xf32>
    %42 = arith.mulf %41, %41 : vector<8x32xf32>
    %cst_32 = arith.constant dense<0.000000e+00> : vector<8xf32>
    %43 = vector.multi_reduction <add>, %42, %cst_32 [1] : vector<8x32xf32> to vector<8xf32>
    %44 = vector.shape_cast %43 : vector<8xf32> to vector<8x1xf32>
    %cst_33 = arith.constant 3.200000e+01 : f32
    %45 = vector.broadcast %cst_33 : f32 to vector<8x1xf32>
    %46 = arith.divf %44, %45 : vector<8x1xf32>
    %47 = vector.broadcast %39 : vector<8x1xf32> to vector<8x32xf32>
    %48 = arith.subf %33, %47 : vector<8x32xf32>
    %cst_34 = arith.constant 9.99999997E-7 : f32
    %49 = vector.broadcast %cst_34 : f32 to vector<8x1xf32>
    %50 = arith.addf %46, %49 : vector<8x1xf32>
    %51 = math.rsqrt %50 : vector<8x1xf32>
    %52 = vector.broadcast %51 : vector<8x1xf32> to vector<8x32xf32>
    %53 = arith.mulf %48, %52 : vector<8x32xf32>
    %54 = vector.broadcast %34 : vector<1x32xf32> to vector<8x32xf32>
    %55 = arith.mulf %53, %54 : vector<8x32xf32>
    %56 = vector.broadcast %35 : vector<1x32xf32> to vector<8x32xf32>
    %57 = arith.addf %55, %56 : vector<8x32xf32>
    %58 = arith.truncf %57 : vector<8x32xf32> to vector<8x32xbf16>
    %c0_35 = arith.constant 0 : index
    %c0_36 = arith.constant 0 : index
    %59 = vector.load %arg11[%c0_35, %c0_36] : memref<32x128xbf16, #tpu.memory_space<vmem>>, vector<32x128xbf16>
    %cst_37 = arith.constant dense<0.000000e+00> : vector<8x128xf32>
    %60 = tpu.matmul %58, %59, %cst_37 {dimension_numbers = #tpu.dot_dimension_numbers<[1], [0], [0], [1], [0, 0, 1, 1], [], []>} : vector<8x32xbf16>, vector<32x128xbf16>, vector<8x128xf32> -> vector<8x128xf32>
    %c0_38 = arith.constant 0 : index
    %c0_39 = arith.constant 0 : index
    %61 = vector.load %arg12[%c0_38, %c0_39] : memref<1x128xf32, #tpu.memory_space<vmem>>, vector<1x128xf32>
    %62 = vector.broadcast %61 : vector<1x128xf32> to vector<8x128xf32>
    %63 = arith.addf %60, %62 : vector<8x128xf32>
    %64 = arith.mulf %63, %63 : vector<8x128xf32>
    %65 = arith.mulf %63, %64 : vector<8x128xf32>
    %cst_40 = arith.constant 4.471500e-02 : f32
    %66 = vector.broadcast %cst_40 : f32 to vector<8x128xf32>
    %67 = arith.mulf %66, %65 : vector<8x128xf32>
    %68 = arith.addf %63, %67 : vector<8x128xf32>
    %cst_41 = arith.constant 0.797884583 : f32
    %69 = vector.broadcast %cst_41 : f32 to vector<8x128xf32>
    %70 = arith.mulf %69, %68 : vector<8x128xf32>
    %71 = math.tanh %70 : vector<8x128xf32>
    %cst_42 = arith.constant 1.000000e+00 : f32
    %72 = vector.broadcast %cst_42 : f32 to vector<8x128xf32>
    %73 = arith.addf %72, %71 : vector<8x128xf32>
    %cst_43 = arith.constant 5.000000e-01 : f32
    %74 = vector.broadcast %cst_43 : f32 to vector<8x128xf32>
    %75 = arith.mulf %74, %73 : vector<8x128xf32>
    %76 = arith.mulf %63, %75 : vector<8x128xf32>
    %77 = arith.truncf %76 : vector<8x128xf32> to vector<8x128xbf16>
    %c0_44 = arith.constant 0 : index
    %c0_45 = arith.constant 0 : index
    %78 = vector.load %arg13[%c0_44, %c0_45] : memref<128x32xbf16, #tpu.memory_space<vmem>>, vector<128x32xbf16>
    %cst_46 = arith.constant dense<0.000000e+00> : vector<8x32xf32>
    %79 = tpu.matmul %77, %78, %cst_46 {dimension_numbers = #tpu.dot_dimension_numbers<[1], [0], [0], [1], [0, 0, 1, 1], [], []>} : vector<8x128xbf16>, vector<128x32xbf16>, vector<8x32xf32> -> vector<8x32xf32>
    %c0_47 = arith.constant 0 : index
    %c0_48 = arith.constant 0 : index
    %80 = vector.load %arg14[%c0_47, %c0_48] : memref<1x32xf32, #tpu.memory_space<vmem>>, vector<1x32xf32>
    %81 = vector.broadcast %80 : vector<1x32xf32> to vector<8x32xf32>
    %82 = arith.addf %79, %81 : vector<8x32xf32>
    %83 = arith.addf %33, %82 : vector<8x32xf32>
    %84 = arith.truncf %83 : vector<8x32xf32> to vector<8x32xbf16>
    %c0_49 = arith.constant 0 : index
    %c0_50 = arith.constant 0 : index
    %c0_51 = arith.constant 0 : index
    %85 = vector.load %arg15[%c0_49, %c0_50, %c0_51] : memref<1x8x32xbf16, #tpu.memory_space<vmem>>, vector<1x8x32xbf16>
    %86 = vector.shape_cast %85 : vector<1x8x32xbf16> to vector<8x32xbf16>
    %87 = vector.shape_cast %84 : vector<8x32xbf16> to vector<1x8x32xbf16>
    tpu.vector_store %arg15[%c0_49, %c0_50, %c0_51], %87 {strides = array<i32>} : memref<1x8x32xbf16, #tpu.memory_space<vmem>>, vector<1x8x32xbf16>,
    return
  }
  func.func @transform_0(%arg0: i32, %arg1: i32) -> (i32, i32, i32, i32) {
    %c0_i32 = arith.constant 0 : i32
    %c0_i32_0 = arith.constant 0 : i32
    %c0_i32_1 = arith.constant 0 : i32
    return %arg0, %c0_i32, %arg1, %c0_i32_0 : i32, i32, i32, i32
  }
  func.func @transform_1(%arg0: i32, %arg1: i32) -> (i32, i32, i32, i32) {
    %c0_i32 = arith.constant 0 : i32
    %c0_i32_0 = arith.constant 0 : i32
    %c0_i32_1 = arith.constant 0 : i32
    %c0_i32_2 = arith.constant 0 : i32
    return %arg0, %c0_i32, %c0_i32_0, %c0_i32_1 : i32, i32, i32, i32
  }
  func.func @transform_2(%arg0: i32, %arg1: i32) -> (i32, i32, i32, i32) {
    %c0_i32 = arith.constant 0 : i32
    %c0_i32_0 = arith.constant 0 : i32
    %c0_i32_1 = arith.constant 0 : i32
    %c0_i32_2 = arith.constant 0 : i32
    return %arg0, %c0_i32, %c0_i32_0, %c0_i32_1 : i32, i32, i32, i32
  }
  func.func @transform_3(%arg0: i32, %arg1: i32) -> (i32, i32, i32) {
    %c0_i32 = arith.constant 0 : i32
    %c0_i32_0 = arith.constant 0 : i32
    return %arg0, %arg1, %c0_i32 : i32, i32, i32
  }
  func.func @transform_4(%arg0: i32, %arg1: i32) -> (i32, i32) {
    %c0_i32 = arith.constant 0 : i32
    %c0_i32_0 = arith.constant 0 : i32
    %c0_i32_1 = arith.constant 0 : i32
    return %c0_i32, %c0_i32_0 : i32, i32
  }
  func.func @transform_5(%arg0: i32, %arg1: i32) -> (i32, i32, i32) {
    %c0_i32 = arith.constant 0 : i32
    %c0_i32_0 = arith.constant 0 : i32
    %c0_i32_1 = arith.constant 0 : i32
    %c0_i32_2 = arith.constant 0 : i32
    return %c0_i32, %c0_i32_0, %c0_i32_1 : i32, i32, i32
  }
  func.func @transform_6(%arg0: i32, %arg1: i32) -> (i32, i32) {
    %c0_i32 = arith.constant 0 : i32
    %c0_i32_0 = arith.constant 0 : i32
    %c0_i32_1 = arith.constant 0 : i32
    return %c0_i32, %c0_i32_0 : i32, i32
  }
  func.func @transform_7(%arg0: i32, %arg1: i32) -> (i32, i32) {
    %c0_i32 = arith.constant 0 : i32
    %c0_i32_0 = arith.constant 0 : i32
    %c0_i32_1 = arith.constant 0 : i32
    return %c0_i32, %c0_i32_0 : i32, i32
  }
  func.func @transform_8(%arg0: i32, %arg1: i32) -> (i32, i32) {
    %c0_i32 = arith.constant 0 : i32
    %c0_i32_0 = arith.constant 0 : i32
    %c0_i32_1 = arith.constant 0 : i32
    return %c0_i32, %c0_i32_0 : i32, i32
  }
  func.func @transform_9(%arg0: i32, %arg1: i32) -> (i32, i32) {
    %c0_i32 = arith.constant 0 : i32
    %c0_i32_0 = arith.constant 0 : i32
    %c0_i32_1 = arith.constant 0 : i32
    return %c0_i32, %c0_i32_0 : i32, i32
  }
  func.func @transform_10(%arg0: i32, %arg1: i32) -> (i32, i32) {
    %c0_i32 = arith.constant 0 : i32
    %c0_i32_0 = arith.constant 0 : i32
    %c0_i32_1 = arith.constant 0 : i32
    return %c0_i32, %c0_i32_0 : i32, i32
  }
  func.func @transform_11(%arg0: i32, %arg1: i32) -> (i32, i32) {
    %c0_i32 = arith.constant 0 : i32
    %c0_i32_0 = arith.constant 0 : i32
    %c0_i32_1 = arith.constant 0 : i32
    return %c0_i32, %c0_i32_0 : i32, i32
  }
  func.func @transform_12(%arg0: i32, %arg1: i32) -> (i32, i32) {
    %c0_i32 = arith.constant 0 : i32
    %c0_i32_0 = arith.constant 0 : i32
    %c0_i32_1 = arith.constant 0 : i32
    return %c0_i32, %c0_i32_0 : i32, i32
  }
  func.func @transform_13(%arg0: i32, %arg1: i32) -> (i32, i32, i32) {
    %c0_i32 = arith.constant 0 : i32
    %c0_i32_0 = arith.constant 0 : i32
    return %arg0, %arg1, %c0_i32 : i32, i32, i32
  }
}

module attributes {stable_mosaic.version = 11 : i64} {
  func.func @head_kernel(%arg0: memref<2x2x32xbf16, #tpu.memory_space<vmem>>, %arg1: memref<1x32xf32, #tpu.memory_space<vmem>>, %arg2: memref<1x32xf32, #tpu.memory_space<vmem>>, %arg3: memref<1x32xf32, #tpu.memory_space<vmem>>, %arg4: memref<1x32xf32, #tpu.memory_space<vmem>>, %arg5: memref<32x8xbf16, #tpu.memory_space<vmem>>, %arg6: memref<1x8xf32, #tpu.memory_space<vmem>>, %arg7: memref<2x8xf32, #tpu.memory_space<vmem>>) attributes {dimension_semantics = [], scalar_prefetch = 0 : i64, scratch_operands = 0 : i64, tpu.core_type = #tpu.core_type<tc>} {
    %c0 = arith.constant 0 : index
    %c0_0 = arith.constant 0 : index
    %c0_1 = arith.constant 0 : index
    %0 = vector.load %arg0[%c0, %c0_0, %c0_1] : memref<2x2x32xbf16, #tpu.memory_space<vmem>>, vector<2x2x32xbf16>
    %1 = arith.extf %0 : vector<2x2x32xbf16> to vector<2x2x32xf32>
    %c0_2 = arith.constant 0 : index
    %c0_3 = arith.constant 0 : index
    %2 = vector.load %arg1[%c0_2, %c0_3] : memref<1x32xf32, #tpu.memory_space<vmem>>, vector<1x32xf32>
    %c0_4 = arith.constant 0 : index
    %c0_5 = arith.constant 0 : index
    %3 = vector.load %arg2[%c0_4, %c0_5] : memref<1x32xf32, #tpu.memory_space<vmem>>, vector<1x32xf32>
    %cst = arith.constant dense<0.000000e+00> : vector<2x2xf32>
    %4 = vector.multi_reduction <add>, %1, %cst [2] : vector<2x2x32xf32> to vector<2x2xf32>
    %5 = vector.shape_cast %4 : vector<2x2xf32> to vector<2x2x1xf32>
    %cst_6 = arith.constant 3.200000e+01 : f32
    %6 = vector.broadcast %cst_6 : f32 to vector<2x2x1xf32>
    %7 = arith.divf %5, %6 : vector<2x2x1xf32>
    %8 = vector.broadcast %7 : vector<2x2x1xf32> to vector<2x2x32xf32>
    %9 = arith.subf %1, %8 : vector<2x2x32xf32>
    %10 = arith.mulf %9, %9 : vector<2x2x32xf32>
    %cst_7 = arith.constant dense<0.000000e+00> : vector<2x2xf32>
    %11 = vector.multi_reduction <add>, %10, %cst_7 [2] : vector<2x2x32xf32> to vector<2x2xf32>
    %12 = vector.shape_cast %11 : vector<2x2xf32> to vector<2x2x1xf32>
    %cst_8 = arith.constant 3.200000e+01 : f32
    %13 = vector.broadcast %cst_8 : f32 to vector<2x2x1xf32>
    %14 = arith.divf %12, %13 : vector<2x2x1xf32>
    %15 = vector.broadcast %7 : vector<2x2x1xf32> to vector<2x2x32xf32>
    %16 = arith.subf %1, %15 : vector<2x2x32xf32>
    %cst_9 = arith.constant 9.99999997E-7 : f32
    %17 = vector.broadcast %cst_9 : f32 to vector<2x2x1xf32>
    %18 = arith.addf %14, %17 : vector<2x2x1xf32>
    %19 = math.rsqrt %18 : vector<2x2x1xf32>
    %20 = vector.broadcast %19 : vector<2x2x1xf32> to vector<2x2x32xf32>
    %21 = arith.mulf %16, %20 : vector<2x2x32xf32>
    %22 = vector.shape_cast %2 : vector<1x32xf32> to vector<1x1x32xf32>
    %23 = vector.broadcast %22 : vector<1x1x32xf32> to vector<2x2x32xf32>
    %24 = arith.mulf %21, %23 : vector<2x2x32xf32>
    %25 = vector.shape_cast %3 : vector<1x32xf32> to vector<1x1x32xf32>
    %26 = vector.broadcast %25 : vector<1x1x32xf32> to vector<2x2x32xf32>
    %27 = arith.addf %24, %26 : vector<2x2x32xf32>
    %28 = vector.extract_strided_slice %27 {offsets = [0, 0, 0], sizes = [2, 1, 32], strides = [1, 1, 1]} : vector<2x2x32xf32> to vector<2x1x32xf32>
    %29 = vector.shape_cast %28 : vector<2x1x32xf32> to vector<2x32xf32>
    %30 = vector.extract_strided_slice %27 {offsets = [0, 1, 0], sizes = [2, 1, 32], strides = [1, 1, 1]} : vector<2x2x32xf32> to vector<2x1x32xf32>
    %31 = vector.shape_cast %30 : vector<2x1x32xf32> to vector<2x32xf32>
    %32 = arith.addf %29, %31 : vector<2x32xf32>
    %cst_10 = arith.constant 5.000000e-01 : f32
    %33 = vector.broadcast %cst_10 : f32 to vector<2x32xf32>
    %34 = arith.mulf %32, %33 : vector<2x32xf32>
    %c0_11 = arith.constant 0 : index
    %c0_12 = arith.constant 0 : index
    %35 = vector.load %arg3[%c0_11, %c0_12] : memref<1x32xf32, #tpu.memory_space<vmem>>, vector<1x32xf32>
    %c0_13 = arith.constant 0 : index
    %c0_14 = arith.constant 0 : index
    %36 = vector.load %arg4[%c0_13, %c0_14] : memref<1x32xf32, #tpu.memory_space<vmem>>, vector<1x32xf32>
    %cst_15 = arith.constant dense<0.000000e+00> : vector<2xf32>
    %37 = vector.multi_reduction <add>, %34, %cst_15 [1] : vector<2x32xf32> to vector<2xf32>
    %38 = vector.shape_cast %37 : vector<2xf32> to vector<2x1xf32>
    %cst_16 = arith.constant 3.200000e+01 : f32
    %39 = vector.broadcast %cst_16 : f32 to vector<2x1xf32>
    %40 = arith.divf %38, %39 : vector<2x1xf32>
    %41 = vector.broadcast %40 : vector<2x1xf32> to vector<2x32xf32>
    %42 = arith.subf %34, %41 : vector<2x32xf32>
    %43 = arith.mulf %42, %42 : vector<2x32xf32>
    %cst_17 = arith.constant dense<0.000000e+00> : vector<2xf32>
    %44 = vector.multi_reduction <add>, %43, %cst_17 [1] : vector<2x32xf32> to vector<2xf32>
    %45 = vector.shape_cast %44 : vector<2xf32> to vector<2x1xf32>
    %cst_18 = arith.constant 3.200000e+01 : f32
    %46 = vector.broadcast %cst_18 : f32 to vector<2x1xf32>
    %47 = arith.divf %45, %46 : vector<2x1xf32>
    %48 = vector.broadcast %40 : vector<2x1xf32> to vector<2x32xf32>
    %49 = arith.subf %34, %48 : vector<2x32xf32>
    %cst_19 = arith.constant 9.99999974E-6 : f32
    %50 = vector.broadcast %cst_19 : f32 to vector<2x1xf32>
    %51 = arith.addf %47, %50 : vector<2x1xf32>
    %52 = math.rsqrt %51 : vector<2x1xf32>
    %53 = vector.broadcast %52 : vector<2x1xf32> to vector<2x32xf32>
    %54 = arith.mulf %49, %53 : vector<2x32xf32>
    %55 = vector.broadcast %35 : vector<1x32xf32> to vector<2x32xf32>
    %56 = arith.mulf %54, %55 : vector<2x32xf32>
    %57 = vector.broadcast %36 : vector<1x32xf32> to vector<2x32xf32>
    %58 = arith.addf %56, %57 : vector<2x32xf32>
    %59 = arith.truncf %58 : vector<2x32xf32> to vector<2x32xbf16>
    %c0_20 = arith.constant 0 : index
    %c0_21 = arith.constant 0 : index
    %60 = vector.load %arg5[%c0_20, %c0_21] : memref<32x8xbf16, #tpu.memory_space<vmem>>, vector<32x8xbf16>
    %cst_22 = arith.constant dense<0.000000e+00> : vector<2x8xf32>
    %61 = tpu.matmul %59, %60, %cst_22 {dimension_numbers = #tpu.dot_dimension_numbers<[1], [0], [0], [1], [0, 0, 1, 1], [], []>} : vector<2x32xbf16>, vector<32x8xbf16>, vector<2x8xf32> -> vector<2x8xf32>
    %c0_23 = arith.constant 0 : index
    %c0_24 = arith.constant 0 : index
    %62 = vector.load %arg6[%c0_23, %c0_24] : memref<1x8xf32, #tpu.memory_space<vmem>>, vector<1x8xf32>
    %63 = vector.broadcast %62 : vector<1x8xf32> to vector<2x8xf32>
    %64 = arith.addf %61, %63 : vector<2x8xf32>
    %c0_25 = arith.constant 0 : index
    %c0_26 = arith.constant 0 : index
    %65 = vector.load %arg7[%c0_25, %c0_26] : memref<2x8xf32, #tpu.memory_space<vmem>>, vector<2x8xf32>
    tpu.vector_store %arg7[%c0_25, %c0_26], %64 {strides = array<i32>} : memref<2x8xf32, #tpu.memory_space<vmem>>, vector<2x8xf32>,
    return
  }
}

</mosaic_0001>

<bundles_post_ra>
// kernel: ast_forward.6
= control target key start
LH: loop header
LB: loop body
LE: loop exit
PB: predicated region body
PF: predicated region fallthrough
CT: control target
= control target key end

     0   :  { %vm199_vm0 = vcmask 257024   ;;  %s341_s1 = inlined_call_operand.vmem [shape: bf16[256,32], index: 1, kind: input, shape index: {}]   ;;  %s342_s0 = inlined_call_operand.vmem [shape: bf16[8,256], index: 0, kind: input, shape index: {}]   ;;  %s343_s2 = inlined_call_operand.vmem [shape: f32[1,32], index: 2, kind: input, shape index: {}]   ;;  %s344_s3 = inlined_call_operand.vmem [shape: bf16[8,32], index: 3, kind: output, shape index: {}]  }
   0x1   :  { %v246_v0 = vld [vmem:[%s341_s1 + $0x78] sm:$0xff]   ;;  %v248_v2 = vld [vmem:[%s341_s1 + $0x70] sm:$0xff]   ;;  %v250_v4 = vld [vmem:[%s341_s1 + $0x68] sm:$0xff]  }
   0x2   :  { %v247_v1 = vld [vmem:[%s341_s1 + $0x38] sm:$0xff]   ;;  %224 = vmatprep.subr.bf16.mxu0 %v246_v0  ;;  %v249_v3 = vld [vmem:[%s341_s1 + $0x30] sm:$0xff]   ;;  %v251_v5 = vld [vmem:[%s341_s1 + $0x28] sm:$0xff]  }
   0x3   :  { %225 = vmatpush3.bf16.msra.mxu0 %v247_v1  ;;  %v252_v6 = vld [vmem:[%s341_s1 + $0x60] sm:$0xff]   ;;  %v254_v8 = vld [vmem:[%s341_s1 + $0x58] sm:$0xff]   ;;  %v256_v10 = vld [vmem:[%s341_s1 + $0x50] sm:$0xff]  }
   0x4   :  { %226 = vmatprep.subr.bf16.mxu0 %v248_v2  ;;  %v253_v7 = vld [vmem:[%s341_s1 + $0x20] sm:$0xff]   ;;  %v255_v9 = vld [vmem:[%s341_s1 + $0x18] sm:$0xff]   ;;  %v257_v13 = vld [vmem:[%s341_s1 + $0x10] sm:$0xff]  }
   0x5   :  { %v15_v11 = vld [vmem:[%s342_s0] sm:$0xff]  ;;  %v258_v14 = vld [vmem:[%s341_s1 + $0x48] sm:$0xff]  }
   0x6   :  { %v207_v12 = vcombine.high %v15_v11, %v15_v11  ;;  %v259_v15 = vld [vmem:[%s341_s1 + $0x8] sm:$0xff]   ;;  %v260_v16 = vld [vmem:[%s341_s1 + $0x40] sm:$0xff]   ;;  %v206_v18 = vcombine.low %v15_v11, %v15_v11 }
   0x7   :  { %227 = vmatpush3.bf16.msra.mxu0 %v249_v3  ;;  %v261_v17 = vld [vmem:[%s341_s1] sm:$0xff]  }
   0x8   :  { %228 = vmatprep.subr.bf16.mxu0 %v250_v4  ;;  %190 = vmatprep.mubr.bf16.mxu0 %v207_v12  ;;  %v205_v20 = vld [vmem:[%s343_s2] ss:$0 sm:$0xff] }
   0xb   :  { %229 = vmatpush3.bf16.msra.mxu0 %v251_v5 }
   0xc   :  { %230 = vmatprep.subr.bf16.mxu0 %v252_v6 }
   0xf   :  { %231 = vmatpush3.bf16.msra.mxu0 %v253_v7 }
  0x10   :  { %232 = vmatprep.subr.bf16.mxu0 %v254_v8 }
  0x13   :  { %233 = vmatpush3.bf16.msra.mxu0 %v255_v9 }
  0x14   :  { %234 = vmatprep.subr.bf16.mxu0 %v256_v10 }
  0x17   :  { %235 = vmatpush3.bf16.msra.mxu0 %v257_v13 }
  0x18   :  { %236 = vmatprep.subr.bf16.mxu0 %v258_v14 }
  0x1b   :  { %237 = vmatpush3.bf16.msra.mxu0 %v259_v15 }
  0x1c   :  { %238 = vmatprep.subr.bf16.mxu0 %v260_v16 }
  0x1f   :  { %239 = vmatpush3.bf16.msra.mxu0 %v261_v17 }
  0x22   :  { %191 = vmatmul.mubr.bf16.vlgmr.msra.gmra.mxu0 %v206_v18 }
  0xe2   :  { %v240_v19 = vpop.f32.mrf.mxu0 }
  0xe4   :  { %v241_v21 = vpop.f32.mrf.mxu0 }
  0xe5   :  { %v242_v22 = vadd.f32 %v241_v21, %v240_v19 }
  0xe6   :  { %v243_v23 = vpop.f32.mrf.mxu0 }
  0xe7   :  { %v193_v24 = vadd.f32 %v242_v22, %v205_v20 }
  0xe8   :  { %v244_v25 = vpop.f32.mrf.mxu0 }
  0xe9   :  { %v198_v26 = vpack.c.bf16 %v193_v24, %v193_v24 }
  0xeb   :  { %200 = vst.msk [vmem:[%s344_s3] sm:$0xf] %vm199_vm0, %v198_v26 }

// kernel: ast_forward.7
= control target key start
LH: loop header
LB: loop body
LE: loop exit
PB: predicated region body
PF: predicated region fallthrough
CT: control target
= control target key end

     0   :  { %s874_s24 = smov 0   ;;  %s876_s25 = smov 0   ;;  %s958_s0 = inlined_call_operand.vmem [shape: bf16[2,8,32], index: 0, kind: input, shape index: {}]   ;;  %s959_s1 = inlined_call_operand.vmem [shape: f32[1,32], index: 1, kind: input, shape index: {}]   ;;  %s960_s2 = inlined_call_operand.vmem [shape: f32[1,32], index: 2, kind: input, shape index: {}]   ;;  %s961_s3 = inlined_call_operand.vmem [shape: bf16[32,96], index: 3, kind: input, shape index: {}]   ;;  %s962_s4 = inlined_call_operand.vmem [shape: f32[1,96], index: 4, kind: input, shape index: {}]   ;;  %s963_s5 = inlined_call_operand.vmem [shape: bf16[2,4,8,8], index: 5, kind: output, shape index: {0}]   ;;  %s964_s6 = inlined_call_operand.vmem [shape: bf16[2,4,8,8], index: 6, kind: output, shape index: {1}]   ;;  %s965_s7 = inlined_call_operand.vmem [shape: bf16[2,4,8,8], index: 7, kind: output, shape index: {2}]  }
   0x1   :  { %s878_s26 = smov 0  }
   0x2 LB: > { %s30_s27 = sadd.s32 1, %s818_s25  ;;  %p719_p0 = scmp.ge.s32.totalorder %s822_s26, 1  ;;  %s822_s26 = sphi %s878_s26, %s18_s26   ;;  %s818_s25 = sphi %s876_s25, %s967_s25   ;;  %s814_s24 = sphi %s874_s24, %s966_s24  }
   0x3   : > { %p32_p1 = scmp.ge.s32.totalorder %s30_s27, 2  ;;  %p264_p2 = scmp.lt.s32.totalorder %s822_s26, 3 }
   0x5   : > { %s969_s27 = smov (%p32_p1, %s30_s27), 0  ;;  %p265_p3 = pnand %p719_p0, %p264_p2 }
   0x6   : > { %p317_p4 = scmp.lt.s32.totalorder (!%p265_p3), %s814_s24, 1  ;;  %s826_s20 = smov (!%p265_p3), 96  }
   0x7   : > { %268 = sbr.rel (%p265_p3) target bundleno = 778 (0x30a), region = 40  ;;  %s829_s29 = smov (!%p265_p3), 56  }
   0x8   : > { %s830_s30 = smov (!%p265_p3), 48   ;;  %s832_s9 = smov (!%p265_p3), 112  }
   0x9   : > { %s833_s10 = smov (!%p265_p3), 104  }
   0xc   : > { %s971_s24 = smov (!%p317_p4, %s814_s24), 1  ;;  %vm353_vm0 = vcmask 261120   ;;  %v796_v8 = vld [vmem:[%s961_s3 + $0x8] sm:$0xff]   ;;  %v824_v9 = vmov 0.0   ;;  %vm825_vm1 = vmmov 0   ;;  %v797_v10 = vld [vmem:[%s961_s3] sm:$0xff]  }
   0xd   : > { %s720_s28 = sshll.u32 %s971_s24, 2  ;;  %754 = vmatprep.subr.bf16.mxu0 %v824_v9  ;;  %758 = vmatprep.mubr.msk.bf16.mxu0 %vm825_vm1, %v824_v9  ;;  %v727_v15 = vld [vmem:[%s959_s1] ss:$0 sm:$0xff]  ;;  %s917_s19 = sshll.u32 %s971_s24, 4  ;;  %vm487_vm2 = vcmask 60416  }
   0xe   : > { %s323_s8 = scalar_lea.vmem %s958_s0, %s720_s28  ;;  %755 = vmatpush3.bf16.msra.mxu0 %v796_v8  ;;  %v728_v17 = vld [vmem:[%s960_s2] ss:$0 sm:$0xff]  ;;  %s923_s23 = scalar_lea.vmem %s963_s5, %s917_s19 }
   0xf   : > { %v349_v0 = vld [vmem:[%s323_s8] sm:$0xf]  ;;  %756 = vmatprep.subr.bf16.mxu0 %v824_v9  ;;  %s827_s28 = smov 64   ;;  %s828_s24 = smov 120  }
  0x10   : > { %v350_v1 = vunpack.c.l.bf16 %v349_v0  ;;  %v729_v21 = vld [vmem:[%s962_s4] ss:$0 sm:$0xff]  ;;  %s831_s8 = smov 40   ;;  %s347_s13 = scalar_lea.vmem %s965_s7, %s917_s19 }
  0x11   : > { %s339_s16 = scalar_lea.vmem %s964_s6, %s917_s19 }
  0x12   : > { %v354_v2 = vsel %vm353_vm0, %v350_v1, 0.0  ;;  %757 = vmatpush3.bf16.msra.mxu0 %v797_v10 }
  0x13   : > { %355 = vadd.xlane.f32.xlu0 %v354_v2 }
  0x9c   : > { %v356_v3 = vpop.xlane.xlu0 %355 }
  0x9d   : > { %v358_v4 = vmul.f32 0.03125, %v356_v3 }
  0x9f   : > { %v359_v5 = vsub.f32 %v350_v1, %v358_v4 }
  0xa1   : > { %v360_v6 = vmul.f32 %v359_v5, %v359_v5 }
  0xa3   : > { %v361_v7 = vsel %vm353_vm0, %v360_v6, 0.0 }
  0xa4   : > { %362 = vadd.xlane.f32.xlu0 %v361_v7 }
 0x12d   : > { %v363_v11 = vpop.xlane.xlu0 %362 }
 0x12e   : > { %v364_v12 = vmul.f32 0.03125, %v363_v11 }
 0x130   : > { %v365_v13 = vadd.f32 1e-06, %v364_v12 }
 0x132   : > { %798 = vrsqrt.f32 %v365_v13 }
 0x13f   : > { %v799_v14 = vpop.eup %798 }
 0x140   : > { %v367_v16 = vmul.f32 %v799_v14, %v359_v5 }
 0x142   : > { %v374_v18 = vmul.f32 %v727_v15, %v367_v16 }
 0x144   : > { %v381_v19 = vadd.f32 %v728_v17, %v374_v18 }
 0x146   : > { %v382_v20 = vpack.c.bf16 %v381_v19, %v381_v19 }
 0x148   : > { %759 = vmatmul.mubr.msk.bf16.vlgmr.msra.gmra.mxu0 %vm353_vm0, %v382_v20 }
 0x208   : > { %v443_v22 = vpop.f32.mrf.mxu0 }
 0x209   : > { %v444_v23 = vadd.f32 %v729_v21, %v443_v22 }
 0x20a   : > { %v760_v24 = vpop.f32.mrf.mxu0 }
 0x20b   : > { %v449_v25 = vmul.f32 0.35355338, %v444_v23  ;;  %451 = vrot.lane.b32.xlu1 %v444_v23, %s826_s20  ;;  %v749_v28 = vpack.c.bf16 %v444_v23, %v444_v23 }
 0x20c   : > { %v446_v26 = vpop.f32.mrf.mxu0 }
 0x20d   : > { %v486_v27 = vpack.c.bf16 %v449_v25, %v449_v25 }
 0x20e   : > { %v761_v29 = vpop.f32.mrf.mxu0 }
 0x20f   : > { %495 = vrot.lane.b32.xlu1 %v749_v28, %s827_s28  ;;  %502 = vrot.lane.b32.xlu0 %v486_v27, %s828_s24  ;;  %488 = vst.msk [vmem:[%s923_s23] sm:$0xf] %vm487_vm2, %v486_v27 }
 0x213   : > { %510 = vrot.lane.b32.xlu1 %v749_v28, %s829_s29 }
 0x217   : > { %523 = vrot.lane.b32.xlu1 %v749_v28, %s830_s30 }
 0x21b   : > { %536 = vrot.lane.b32.xlu1 %v749_v28, %s831_s8 }
 0x21f   : > { %515 = vrot.lane.b32.xlu1 %v486_v27, %s832_s9 }
 0x223   : > { %528 = vrot.lane.b32.xlu1 %v486_v27, %s833_s10 }
 0x27d   : > { %v452_v30 = vpop.permute.xlu1 %451 }
 0x27e   : > { %454 = vxpose.xlu1.b32.start.end [1/1] (short) (narrow) %v452_v30, 32 }
 0x281   : > { %v496_v31 = vpop.permute.xlu1 %495  ;;  %v503_v32 = vpop.permute.xlu0 %502 }
 0x282   : > { %498 = vst.msk [vmem:[%s347_s13] sm:$0xf] %vm487_vm2, %v496_v31  ;;  %735 = vst.msk [vmem:[%s923_s23 + $0x4] sm:$0xf] %vm487_vm2, %v503_v32 }
 0x285   : > { %v511_v33 = vpop.permute.xlu1 %510 }
 0x286   : > { %737 = vst.msk [vmem:[%s347_s13 + $0x4] sm:$0xf] %vm487_vm2, %v511_v33 }
 0x289   : > { %v524_v34 = vpop.permute.xlu1 %523 }
 0x28a   : > { %740 = vst.msk [vmem:[%s347_s13 + $0x8] sm:$0xf] %vm487_vm2, %v524_v34 }
 0x28d   : > { %v537_v35 = vpop.permute.xlu1 %536 }
 0x28e   : > { %743 = vst.msk [vmem:[%s347_s13 + $0xc] sm:$0xf] %vm487_vm2, %v537_v35 }
 0x291   : > { %v516_v36 = vpop.permute.xlu1 %515 }
 0x292   : > { %738 = vst.msk [vmem:[%s923_s23 + $0x8] sm:$0xf] %vm487_vm2, %v516_v36 }
 0x295   : > { %v529_v37 = vpop.permute.xlu1 %528 }
 0x296   : > { %741 = vst.msk [vmem:[%s923_s23 + $0xc] sm:$0xf] %vm487_vm2, %v529_v37 }
 0x2fa   : > { %v470_v38 = vpop.trf.xlu1 }
 0x2fb   : > { %v489_v39 = vpack.c.bf16 %v470_v38, %v470_v38 }
 0x2fd   : > { %490 = vst.msk [vmem:[%s339_s16] sm:$0xf] %vm487_vm2, %v489_v39 }
 0x2fe   : > { %v471_v40 = vpop.trf.xlu1 }
 0x2ff   : > { %v507_v41 = vpack.c.bf16 %v471_v40, %v471_v40 }
 0x301   : > { %736 = vst.msk [vmem:[%s339_s16 + $0x4] sm:$0xf] %vm487_vm2, %v507_v41 }
 0x302   : > { %v472_v42 = vpop.trf.xlu1 }
 0x303   : > { %v520_v43 = vpack.c.bf16 %v472_v42, %v472_v42 }
 0x305   : > { %739 = vst.msk [vmem:[%s339_s16 + $0x8] sm:$0xf] %vm487_vm2, %v520_v43 }
 0x306   : > { %v473_v44 = vpop.trf.xlu1 }
 0x307   : > { %v533_v45 = vpack.c.bf16 %v473_v44, %v473_v44 }
 0x309   : > { %742 = vst.msk [vmem:[%s339_s16 + $0xc] sm:$0xf] %vm487_vm2, %v533_v45 }
 0x30a PF: > { %s18_s26 = sadd.s32 1, %s822_s26   ;;  %s966_s24 = smov %s818_s25 }
 0x30b   : > { %p15_p5 = scmp.ge.s32.totalorder %s18_s26, 4   ;;  %s967_s25 = smov %s969_s27 }
 0x30d   :  { %17 = sbr.rel (!%p15_p5) target bundleno = 2 (0x2), region = 103 }

// kernel: ast_forward.8
= control target key start
LH: loop header
LB: loop body
LE: loop exit
PB: predicated region body
PF: predicated region fallthrough
CT: control target
= control target key end

     0   :  { %s1860_s25 = smov 0   ;;  %s1862_s26 = smov 0   ;;  %s2069_s0 = inlined_call_operand.vmem [shape: bf16[2,4,8,8], index: 0, kind: input, shape index: {}]   ;;  %s2070_s1 = inlined_call_operand.vmem [shape: bf16[2,4,8,8], index: 1, kind: input, shape index: {}]   ;;  %s2071_s2 = inlined_call_operand.vmem [shape: bf16[2,4,8,8], index: 2, kind: input, shape index: {}]   ;;  %s2072_s3 = inlined_call_operand.vmem [shape: bf16[2,8,32], index: 3, kind: input, shape index: {}, may-alias: {3,13}]   ;;  %s2073_s4 = inlined_call_operand.vmem [shape: f32[1,8], index: 4, kind: input, shape index: {}]   ;;  %s2074_s5 = inlined_call_operand.vmem [shape: bf16[4,8,32], index: 5, kind: input, shape index: {}]   ;;  %s2075_s6 = inlined_call_operand.vmem [shape: f32[1,32], index: 6, kind: input, shape index: {}]   ;;  %s2076_s7 = inlined_call_operand.vmem [shape: f32[1,32], index: 7, kind: input, shape index: {}]   ;;  %s2077_s8 = inlined_call_operand.vmem [shape: f32[1,32], index: 8, kind: input, shape index: {}]   ;;  %s2078_s9 = inlined_call_operand.vmem [shape: bf16[32,128], index: 9, kind: input, shape index: {}]   ;;  %s2079_s10 = inlined_call_operand.vmem [shape: f32[1,128], index: 10, kind: input, shape index: {}]   ;;  %s2080_s11 = inlined_call_operand.vmem [shape: bf16[128,32], index: 11, kind: input, shape index: {}]   ;;  %s2081_s12 = inlined_call_operand.vmem [shape: f32[1,32], index: 12, kind: input, shape index: {}]   ;;  %s2082_s13 = inlined_call_operand.vmem [shape: bf16[2,8,32], index: 13, kind: output, shape index: {}, may-alias: {3,13}]  }
   0x1   :  { %s1864_s27 = smov 0  }
   0x2 LB: > { %s35_s28 = sadd.s32 1, %s1782_s26  ;;  %p1529_p0 = scmp.ge.s32.totalorder %s1786_s27, 1  ;;  %s1786_s27 = sphi %s1864_s27, %s23_s27   ;;  %s1782_s26 = sphi %s1862_s26, %s2084_s26   ;;  %s1778_s25 = sphi %s1860_s25, %s2083_s25  }
   0x3   : > { %p37_p1 = scmp.ge.s32.totalorder %s35_s28, 2  ;;  %p440_p2 = scmp.lt.s32.totalorder %s1786_s27, 3 }
   0x5   : > { %s2086_s28 = smov (%p37_p1, %s35_s28), 0  ;;  %p441_p3 = pnand %p1529_p0, %p440_p2 }
   0x6   : > { %p506_p4 = scmp.lt.s32.totalorder (!%p441_p3), %s1778_s25, 1 }
   0x7   : > { %444 = sbr.rel (%p441_p3) target bundleno = 1681 (0x691), region = 72 }
   0xc   : > { %v1788_v0 = vmov 0.0   ;;  %vm1789_vm0 = vmmov 0   ;;  %s2088_s25 = smov (!%p506_p4, %s1778_s25), 1  ;;  %vm562_vm1 = vcmask 1043456   ;;  %vm558_vm2 = vcmask 64512  }
   0xd   : > { %1608 = vmatprep.subr.bf16.mxu0 %v1788_v0  ;;  %1610 = vmatprep.mubr.msk.bf16.mxu0 %vm1789_vm0, %v1788_v0  ;;  %s1887_s29 = sshll.u32 %s2088_s25, 4  ;;  %v1538_v13 = vld [vmem:[%s2073_s4] ss:$0 sm:$0xff]  ;;  %s1536_s19 = sshll.u32 %s2088_s25, 2  ;;  %vm1168_vm3 = vcmask 261120   ;;  %vm1407_vm4 = vcmask 257024  }
   0xe   : > { %1626 = vmatprep.subr.bf16.mxu1 %v1788_v0  ;;  %1628 = vmatprep.mubr.msk.bf16.mxu1 %vm1789_vm0, %v1788_v0  ;;  %s518_s15 = scalar_lea.vmem %s2070_s1, %s1887_s29  ;;  %s513_s18 = scalar_lea.vmem %s2069_s0, %s1887_s29 }
   0xf   : > { %v543_v1 = vld [vmem:[%s518_s15] sm:$0xf]  ;;  %v544_v2 = vld [vmem:[%s518_s15 + $0x4] sm:$0xf]  ;;  %v546_v5 = vld [vmem:[%s518_s15 + $0xc] sm:$0xf]  ;;  %s523_s23 = scalar_lea.vmem %s2071_s2, %s1887_s29  ;;  %s530_s22 = scalar_lea.vmem %s2072_s3, %s1536_s19 }
  0x10   : > { %v564_v3 = vsel %vm562_vm1, %v543_v1, 0  ;;  %v539_v4 = vld [vmem:[%s513_s18] sm:$0xf]  ;;  %v610_v6 = vsel %vm562_vm1, %v544_v2, 0  ;;  %v702_v7 = vsel %vm562_vm1, %v546_v5, 0 }
  0x11   : > { %1609 = vmatpush3.bf16.msra.mxu0 %v564_v3  ;;  %v542_v8 = vld [vmem:[%s513_s18 + $0xc] sm:$0xf]  ;;  %1627 = vmatpush3.bf16.msra.mxu1 %v702_v7  ;;  %v545_v9 = vld [vmem:[%s518_s15 + $0x8] sm:$0xf]  ;;  %v540_v10 = vld [vmem:[%s513_s18 + $0x4] sm:$0xf] }
  0x12   : > { %1614 = vmatprep.subr.bf16.mxu0 %v1788_v0  ;;  %1638 = vmatprep.subr.bf16.mxu1 %v1788_v0  ;;  %v656_v11 = vsel %vm562_vm1, %v545_v9, 0  ;;  %v541_v12 = vld [vmem:[%s513_s18 + $0x8] sm:$0xf]  ;;  %v547_v58 = vld [vmem:[%s523_s23] sm:$0xf]  ;;  %s537_s18 = scalar_lea.vmem %s2082_s13, %s1536_s19 }
  0x13   : > { %v796_v59 = vsel %vm562_vm1, %v547_v58, 0  ;;  %v548_v60 = vld [vmem:[%s523_s23 + $0x4] sm:$0xf]  ;;  %v549_v2 = vld [vmem:[%s523_s23 + $0x8] sm:$0xf] }
  0x14   : > { %1611 = vmatmul.mubr.msk.bf16.vlgmr.msra.gmra.mxu0 %vm558_vm2, %v539_v4  ;;  %1629 = vmatmul.mubr.msk.bf16.vlgmr.msra.gmra.mxu1 %vm558_vm2, %v542_v8  ;;  %v842_v61 = vsel %vm562_vm1, %v548_v60, 0  ;;  %v550_v9 = vld [vmem:[%s523_s23 + $0xc] sm:$0xf] }
  0x15   : > { %1615 = vmatpush3.bf16.msra.mxu0 %v610_v6  ;;  %1616 = vmatprep.mubr.msk.bf16.mxu0 %vm1789_vm0, %v1788_v0  ;;  %v888_v6 = vsel %vm562_vm1, %v549_v2, 0 }
  0x16   : > { %1620 = vmatprep.subr.bf16.mxu0 %v1788_v0  ;;  %1640 = vmatprep.mubr.msk.bf16.mxu1 %vm1789_vm0, %v1788_v0 }
  0x17   : > { %1639 = vmatpush3.bf16.msra.mxu1 %v842_v61  ;;  %v1184_v61 = vld [vmem:[%s530_s22] sm:$0xf] }
  0x18   : > { %1650 = vmatprep.subr.bf16.mxu1 %v1788_v0 }
  0x1c   : > { %1617 = vmatmul.mubr.msk.bf16.vlgmr.msra.gmra.mxu0 %vm558_vm2, %v540_v10 }
  0x1d   : > { %1621 = vmatpush3.bf16.msra.mxu0 %v656_v11  ;;  %1622 = vmatprep.mubr.msk.bf16.mxu0 %vm1789_vm0, %v1788_v0 }
  0x1e   : > { %1632 = vmatprep.subr.bf16.mxu0 %v1788_v0 }
  0x24   : > { %1623 = vmatmul.mubr.msk.bf16.vlgmr.msra.gmra.mxu0 %vm558_vm2, %v541_v12  ;;  %v934_v12 = vsel %vm562_vm1, %v550_v9, 0 }
  0x25   : > { %1634 = vmatprep.mubr.msk.bf16.mxu0 %vm1789_vm0, %v1788_v0  ;;  %1633 = vmatpush3.bf16.msra.mxu0 %v796_v59 }
  0x26   : > { %1644 = vmatprep.subr.bf16.mxu0 %v1788_v0 }
  0xd4   : > { %v600_v14 = vpop.f32.mrf.mxu0  ;;  %v738_v17 = vpop.f32.mrf.mxu1 }
  0xd5   : > { %v601_v15 = vadd.f32 %v1538_v13, %v600_v14  ;;  %v739_v31 = vadd.f32 %v1538_v13, %v738_v17 }
  0xd6   : > { %v1612_v16 = vpop.f32.mrf.mxu0  ;;  %v1630_v20 = vpop.f32.mrf.mxu1 }
  0xd7   : > { %v744_v18 = vsel %vm558_vm2, %v601_v15, -inf  ;;  %v753_v36 = vsel %vm558_vm2, %v739_v31, -inf }
  0xd8   : > { %745 = vmax.xlane.f32.xlu0 %v744_v18  ;;  %v603_v19 = vpop.f32.mrf.mxu0  ;;  %v741_v22 = vpop.f32.mrf.mxu1 }
  0xd9   : > { %v980_v19 = vld [vmem:[%s2074_s5] sm:$0xf] }
  0xda   : > { %v1613_v21 = vpop.f32.mrf.mxu0  ;;  %v1631_v24 = vpop.f32.mrf.mxu1  ;;  %v988_v20 = vsel %vm562_vm1, %v980_v19, 0  ;;  %v1735_v19 = vld [vmem:[%s2078_s9] sm:$0xff]  }
  0xdb   : > { %v981_v21 = vld [vmem:[%s2074_s5 + $0x4] sm:$0xf] }
  0xdc   : > { %v646_v23 = vpop.f32.mrf.mxu0  ;;  %v1034_v22 = vsel %vm562_vm1, %v981_v21, 0 }
  0xdd   : > { %v647_v25 = vadd.f32 %v1538_v13, %v646_v23  ;;  %v982_v23 = vld [vmem:[%s2074_s5 + $0x8] sm:$0xf] }
  0xde   : > { %v1618_v26 = vpop.f32.mrf.mxu0 }
  0xdf   : > { %v747_v27 = vsel %vm558_vm2, %v647_v25, -inf  ;;  %v1080_v26 = vsel %vm562_vm1, %v982_v23, 0 }
  0xe0   : > { %748 = vmax.xlane.f32.xlu0 %v747_v27  ;;  %v649_v28 = vpop.f32.mrf.mxu0 }
  0xe2   : > { %v1619_v29 = vpop.f32.mrf.mxu0 }
  0xe4   : > { %v692_v30 = vpop.f32.mrf.mxu0 }
  0xe5   : > { %v693_v32 = vadd.f32 %v1538_v13, %v692_v30  ;;  %v983_v30 = vld [vmem:[%s2074_s5 + $0xc] sm:$0xf] }
  0xe6   : > { %v1624_v33 = vpop.f32.mrf.mxu0 }
  0xe7   : > { %v750_v34 = vsel %vm558_vm2, %v693_v32, -inf  ;;  %v1126_v33 = vsel %vm562_vm1, %v983_v30, 0  ;;  %v1736_v30 = vld [vmem:[%s2080_s11 + $0x38] sm:$0xff]  }
  0xe8   : > { %751 = vmax.xlane.f32.xlu1 %v750_v34  ;;  %v695_v35 = vpop.f32.mrf.mxu0 }
  0xea   : > { %v1625_v37 = vpop.f32.mrf.mxu0 }
  0xec   : > { %754 = vmax.xlane.f32.xlu1 %v753_v36 }
 0x161   : > { %v746_v38 = vpop.xlane.xlu0 %745 }
 0x162   : > { %v756_v39 = vsub.f32 %v601_v15, %v746_v38 }
 0x164   : > { %v760_v40 = vmul.f32 1.442695, %v756_v39 }
 0x166   : > { %1744 = vpow2.f32 %v760_v40 }
 0x169   : > { %v749_v41 = vpop.xlane.xlu0 %748 }
 0x16a   : > { %v757_v42 = vsub.f32 %v647_v25, %v749_v41 }
 0x16c   : > { %v762_v43 = vmul.f32 1.442695, %v757_v42 }
 0x16e   : > { %1746 = vpow2.f32 %v762_v43 }
 0x171   : > { %v752_v44 = vpop.xlane.xlu1 %751 }
 0x172   : > { %v758_v45 = vsub.f32 %v693_v32, %v752_v44 }
 0x173   : > { %v1745_v46 = vpop.eup %1744 }
 0x174   : > { %v764_v47 = vmul.f32 1.442695, %v758_v45  ;;  %v768_v48 = vsel %vm558_vm2, %v1745_v46, 0.0 }
 0x175   : > { %769 = vadd.xlane.f32.xlu0 %v768_v48  ;;  %v755_v49 = vpop.xlane.xlu1 %754 }
 0x176   : > { %1748 = vpow2.f32 %v764_v47  ;;  %v759_v50 = vsub.f32 %v739_v31, %v755_v49 }
 0x178   : > { %v766_v51 = vmul.f32 1.442695, %v759_v50 }
 0x17a   : > { %1750 = vpow2.f32 %v766_v51 }
 0x17b   : > { %v1747_v52 = vpop.eup %1746 }
 0x17c   : > { %v771_v53 = vsel %vm558_vm2, %v1747_v52, 0.0 }
 0x17d   : > { %772 = vadd.xlane.f32.xlu1 %v771_v53 }
 0x183   : > { %v1749_v54 = vpop.eup %1748 }
 0x184   : > { %v774_v55 = vsel %vm558_vm2, %v1749_v54, 0.0 }
 0x185   : > { %775 = vadd.xlane.f32.xlu0 %v774_v55 }
 0x187   : > { %v1751_v56 = vpop.eup %1750 }
 0x188   : > { %v777_v57 = vsel %vm558_vm2, %v1751_v56, 0.0 }
 0x189   : > { %778 = vadd.xlane.f32.xlu1 %v777_v57 }
 0x1fe   : > { %v770_v62 = vpop.xlane.xlu0 %769 }
 0x1ff   : > { %1752 = vrcp.f32 %v770_v62 }
 0x206   : > { %v773_v63 = vpop.xlane.xlu1 %772 }
 0x207   : > { %1754 = vrcp.f32 %v773_v63 }
 0x20c   : > { %v1753_v1 = vpop.eup %1752 }
 0x20d   : > { %v784_v3 = vmul.f32 %v1753_v1, %v1745_v46 }
 0x20e   : > { %v776_v4 = vpop.xlane.xlu0 %775 }
 0x20f   : > { %1756 = vrcp.f32 %v776_v4  ;;  %v788_v5 = vpack.c.bf16 %v784_v3, %v784_v3  ;;  %v1551_v3 = vld [vmem:[%s2075_s6] ss:$0 sm:$0xff] }
 0x211   : > { %1635 = vmatmul.mubr.msk.bf16.vlgmr.msra.gmra.mxu0 %vm558_vm2, %v788_v5 }
 0x212   : > { %v779_v7 = vpop.xlane.xlu1 %778  ;;  %1645 = vmatpush3.bf16.msra.mxu0 %v888_v6  ;;  %1646 = vmatprep.mubr.msk.bf16.mxu0 %vm1789_vm0, %v1788_v0 }
 0x213   : > { %1758 = vrcp.f32 %v779_v7  ;;  %1656 = vmatprep.subr.bf16.mxu0 %v1788_v0  ;;  %v1185_v7 = vunpack.c.l.bf16 %v1184_v61 }
 0x214   : > { %v1755_v8 = vpop.eup %1754 }
 0x215   : > { %v785_v10 = vmul.f32 %v1755_v8, %v1747_v52 }
 0x217   : > { %v789_v11 = vpack.c.bf16 %v785_v10, %v785_v10 }
 0x219   : > { %1641 = vmatmul.mubr.msk.bf16.vlgmr.msra.gmra.mxu1 %vm558_vm2, %v789_v11 }
 0x21a   : > { %1651 = vmatpush3.bf16.msra.mxu1 %v934_v12  ;;  %1652 = vmatprep.mubr.msk.bf16.mxu1 %vm1789_vm0, %v1788_v0 }
 0x21b   : > { %1662 = vmatprep.subr.bf16.mxu1 %v1788_v0 }
 0x21c   : > { %v1757_v13 = vpop.eup %1756 }
 0x21d   : > { %v786_v14 = vmul.f32 %v1757_v13, %v1749_v54 }
 0x21f   : > { %v790_v15 = vpack.c.bf16 %v786_v14, %v786_v14 }
 0x220   : > { %v1759_v16 = vpop.eup %1758 }
 0x221   : > { %1647 = vmatmul.mubr.msk.bf16.vlgmr.msra.gmra.mxu0 %vm558_vm2, %v790_v15  ;;  %v787_v17 = vmul.f32 %v1759_v16, %v1751_v56 }
 0x222   : > { %1658 = vmatprep.mubr.msk.bf16.mxu0 %vm1789_vm0, %v1788_v0  ;;  %1657 = vmatpush3.bf16.msra.mxu0 %v988_v20 }
 0x223   : > { %v791_v18 = vpack.c.bf16 %v787_v17, %v787_v17  ;;  %1668 = vmatprep.subr.bf16.mxu0 %v1788_v0 }
 0x225   : > { %1653 = vmatmul.mubr.msk.bf16.vlgmr.msra.gmra.mxu1 %vm558_vm2, %v791_v18  ;;  %v1734_v18 = vld [vmem:[%s2078_s9 + $0x8] sm:$0xff]  }
 0x226   : > { %1664 = vmatprep.mubr.msk.bf16.mxu1 %vm1789_vm0, %v1788_v0  ;;  %1663 = vmatpush3.bf16.msra.mxu1 %v1034_v22 }
 0x227   : > { %1674 = vmatprep.subr.bf16.mxu1 %v1788_v0 }
 0x2d1   : > { %v832_v24 = vpop.f32.mrf.mxu0 }
 0x2d2   : > { %v976_v25 = vpack.c.bf16 %v832_v24, %v832_v24  ;;  %v1552_v24 = vld [vmem:[%s2076_s7] ss:$0 sm:$0xff] }
 0x2d3   : > { %v1636_v27 = vpop.f32.mrf.mxu0 }
 0x2d4   : > { %1659 = vmatmul.mubr.msk.bf16.vlgmr.msra.gmra.mxu0 %vm558_vm2, %v976_v25 }
 0x2d5   : > { %v835_v28 = vpop.f32.mrf.mxu0  ;;  %1669 = vmatpush3.bf16.msra.mxu0 %v1080_v26  ;;  %1670 = vmatprep.mubr.msk.bf16.mxu0 %vm1789_vm0, %v1788_v0  ;;  %v1553_v26 = vld [vmem:[%s2077_s8] ss:$0 sm:$0xff] }
 0x2d6   : > { %1680 = vmatprep.subr.bf16.mxu0 %v1788_v0 }
 0x2d7   : > { %v1637_v29 = vpop.f32.mrf.mxu0 }
 0x2d9   : > { %v878_v31 = vpop.f32.mrf.mxu1 }
 0x2da   : > { %v977_v32 = vpack.c.bf16 %v878_v31, %v878_v31  ;;  %v1737_v31 = vld [vmem:[%s2080_s11 + $0x30] sm:$0xff]  }
 0x2db   : > { %v1642_v34 = vpop.f32.mrf.mxu1 }
 0x2dc   : > { %1665 = vmatmul.mubr.msk.bf16.vlgmr.msra.gmra.mxu1 %vm558_vm2, %v977_v32  ;;  %v1738_v32 = vld [vmem:[%s2080_s11 + $0x28] sm:$0xff]   ;;  %v1740_v34 = vld [vmem:[%s2080_s11 + $0x18] sm:$0xff]  }
 0x2dd   : > { %v881_v35 = vpop.f32.mrf.mxu1  ;;  %1675 = vmatpush3.bf16.msra.mxu1 %v1126_v33  ;;  %1676 = vmatprep.mubr.msk.bf16.mxu1 %vm1789_vm0, %v1788_v0  ;;  %v1739_v33 = vld [vmem:[%s2080_s11 + $0x20] sm:$0xff]  }
 0x2de   : > { %1688 = vmatprep.subr.bf16.mxu1 %v1788_v0  ;;  %v1741_v35 = vld [vmem:[%s2080_s11 + $0x10] sm:$0xff]  }
 0x2df   : > { %v1643_v36 = vpop.f32.mrf.mxu1 }
 0x2e0   : > { %v1742_v36 = vld [vmem:[%s2080_s11 + $0x8] sm:$0xff]  }
 0x2e1   : > { %v924_v37 = vpop.f32.mrf.mxu0 }
 0x2e2   : > { %v978_v38 = vpack.c.bf16 %v924_v37, %v924_v37  ;;  %v1743_v37 = vld [vmem:[%s2080_s11] sm:$0xff]  }
 0x2e3   : > { %v1648_v39 = vpop.f32.mrf.mxu0 }
 0x2e4   : > { %1671 = vmatmul.mubr.msk.bf16.vlgmr.msra.gmra.mxu0 %vm558_vm2, %v978_v38  ;;  %v1554_v38 = vld [vmem:[%s2079_s10] ss:$0 sm:$0xff] }
 0x2e5   : > { %v927_v40 = vpop.f32.mrf.mxu0  ;;  %v970_v41 = vpop.f32.mrf.mxu1  ;;  %1684 = vmatprep.mubr.msk.bf16.mxu0 %vm1789_vm0, %v1788_v0  ;;  %1681 = vmatpush3.bf16.msra.mxu0 %v1734_v18 }
 0x2e6   : > { %v979_v42 = vpack.c.bf16 %v970_v41, %v970_v41  ;;  %1682 = vmatprep.subr.bf16.mxu0 %v1788_v0 }
 0x2e7   : > { %v1649_v43 = vpop.f32.mrf.mxu0  ;;  %v1654_v44 = vpop.f32.mrf.mxu1 }
 0x2e8   : > { %1677 = vmatmul.mubr.msk.bf16.vlgmr.msra.gmra.mxu1 %vm558_vm2, %v979_v42 }
 0x2e9   : > { %v973_v45 = vpop.f32.mrf.mxu1  ;;  %1704 = vmatprep.mubr.msk.bf16.mxu1 %vm1789_vm0, %v1788_v0  ;;  %1683 = vmatpush3.bf16.msra.mxu0 %v1735_v19 }
 0x2ea   : > { %1689 = vmatpush3.bf16.msra.mxu1 %v1736_v30 }
 0x2eb   : > { %v1655_v46 = vpop.f32.mrf.mxu1  ;;  %1690 = vmatprep.subr.bf16.mxu1 %v1788_v0 }
 0x2ee   : > { %1691 = vmatpush3.bf16.msra.mxu1 %v1737_v31 }
 0x2ef   : > { %1692 = vmatprep.subr.bf16.mxu1 %v1788_v0 }
 0x2f2   : > { %1693 = vmatpush3.bf16.msra.mxu1 %v1738_v32 }
 0x2f3   : > { %1694 = vmatprep.subr.bf16.mxu1 %v1788_v0 }
 0x2f6   : > { %1695 = vmatpush3.bf16.msra.mxu1 %v1739_v33 }
 0x2f7   : > { %1696 = vmatprep.subr.bf16.mxu1 %v1788_v0 }
 0x2fa   : > { %1697 = vmatpush3.bf16.msra.mxu1 %v1740_v34 }
 0x2fb   : > { %1698 = vmatprep.subr.bf16.mxu1 %v1788_v0 }
 0x2fe   : > { %1699 = vmatpush3.bf16.msra.mxu1 %v1741_v35 }
 0x2ff   : > { %1700 = vmatprep.subr.bf16.mxu1 %v1788_v0 }
 0x302   : > { %1701 = vmatpush3.bf16.msra.mxu1 %v1742_v36 }
 0x303   : > { %1702 = vmatprep.subr.bf16.mxu1 %v1788_v0 }
 0x306   : > { %1703 = vmatpush3.bf16.msra.mxu1 %v1743_v37 }
 0x394   : > { %v1024_v47 = vpop.f32.mrf.mxu0 }
 0x395   : > { %v1169_v57 = vsel %vm1168_vm3, %v1024_v47, 0.0 }
 0x396   : > { %v1660_v48 = vpop.f32.mrf.mxu0 }
 0x398   : > { %v1027_v49 = vpop.f32.mrf.mxu0 }
 0x39a   : > { %v1661_v50 = vpop.f32.mrf.mxu0 }
 0x39c   : > { %v1070_v51 = vpop.f32.mrf.mxu1 }
 0x39d   : > { %v1170_v55 = vsel %vm1168_vm3, %v1070_v51, 0.0 }
 0x39e   : > { %v1666_v52 = vpop.f32.mrf.mxu1  ;;  %v1171_v59 = vadd.f32 %v1170_v55, %v1169_v57 }
 0x3a0   : > { %v1073_v53 = vpop.f32.mrf.mxu1 }
 0x3a1   : > { %v1558_v53 = vld [vmem:[%s2081_s12] ss:$0 sm:$0xff] }
 0x3a2   : > { %v1667_v54 = vpop.f32.mrf.mxu1 }
 0x3a4   : > { %v1116_v56 = vpop.f32.mrf.mxu0 }
 0x3a5   : > { %v1172_v58 = vsel %vm1168_vm3, %v1116_v56, 0.0 }
 0x3a6   : > { %v1672_v60 = vpop.f32.mrf.mxu0  ;;  %v1173_v62 = vadd.f32 %v1172_v58, %v1171_v59 }
 0x3a8   : > { %v1119_v63 = vpop.f32.mrf.mxu0  ;;  %v1162_v1 = vpop.f32.mrf.mxu1 }
 0x3a9   : > { %v1174_v2 = vsel %vm1168_vm3, %v1162_v1, 0.0 }
 0x3aa   : > { %v1175_v4 = vadd.f32 %v1174_v2, %v1173_v62  ;;  %v1673_v5 = vpop.f32.mrf.mxu0  ;;  %v1678_v6 = vpop.f32.mrf.mxu1 }
 0x3ac   : > { %v1183_v8 = vadd.f32 %v1551_v3, %v1175_v4  ;;  %v1165_v9 = vpop.f32.mrf.mxu1 }
 0x3ae   : > { %v1679_v10 = vpop.f32.mrf.mxu1  ;;  %v1997_v11 = vadd.f32 %v1185_v7, %v1183_v8 }
 0x3b0   : > { %v1189_v12 = vsel %vm1168_vm3, %v1997_v11, 0.0 }
 0x3b1   : > { %1190 = vadd.xlane.f32.xlu0 %v1189_v12 }
 0x43a   : > { %v1191_v13 = vpop.xlane.xlu0 %1190 }
 0x43b   : > { %v1193_v14 = vmul.f32 0.03125, %v1191_v13 }
 0x43d   : > { %v1194_v15 = vsub.f32 %v1997_v11, %v1193_v14 }
 0x43f   : > { %v1195_v16 = vmul.f32 %v1194_v15, %v1194_v15 }
 0x441   : > { %v1196_v17 = vsel %vm1168_vm3, %v1195_v16, 0.0 }
 0x442   : > { %1197 = vadd.xlane.f32.xlu1 %v1196_v17 }
 0x4cb   : > { %v1198_v20 = vpop.xlane.xlu1 %1197 }
 0x4cc   : > { %v1199_v21 = vmul.f32 0.03125, %v1198_v20 }
 0x4ce   : > { %v1200_v22 = vadd.f32 1e-06, %v1199_v21 }
 0x4d0   : > { %1760 = vrsqrt.f32 %v1200_v22 }
 0x4dd   : > { %v1761_v23 = vpop.eup %1760 }
 0x4de   : > { %v1202_v25 = vmul.f32 %v1761_v23, %v1194_v15 }
 0x4e0   : > { %v1209_v27 = vmul.f32 %v1552_v24, %v1202_v25 }
 0x4e2   : > { %v1216_v28 = vadd.f32 %v1553_v26, %v1209_v27 }
 0x4e4   : > { %v1217_v29 = vpack.c.bf16 %v1216_v28, %v1216_v28 }
 0x4e6   : > { %1685 = vmatmul.mubr.msk.bf16.vlgmr.msra.gmra.mxu0 %vm1168_vm3, %v1217_v29 }
 0x5a6   : > { %v1278_v39 = vpop.f32.mrf.mxu0 }
 0x5a7   : > { %v1279_v40 = vadd.f32 %v1554_v38, %v1278_v39 }
 0x5a8   : > { %v1686_v41 = vpop.f32.mrf.mxu0 }
 0x5a9   : > { %v1284_v42 = vmul.f32 %v1279_v40, %v1279_v40 }
 0x5aa   : > { %v1281_v43 = vpop.f32.mrf.mxu0 }
 0x5ab   : > { %v1285_v44 = vmul.f32 %v1284_v42, %v1279_v40 }
 0x5ac   : > { %v1687_v45 = vpop.f32.mrf.mxu0 }
 0x5ad   : > { %v1286_v46 = vmul.f32 0.044715, %v1285_v44 }
 0x5af   : > { %v1287_v47 = vadd.f32 %v1286_v46, %v1279_v40 }
 0x5b1   : > { %v1288_v48 = vmul.f32 0.7978846, %v1287_v47 }
 0x5b3   : > { %1762 = vtanh.f32 %v1288_v48 }
 0x5c0   : > { %v1763_v49 = vpop.eup %1762 }
 0x5c1   : > { %v1290_v50 = vadd.f32 1.0, %v1763_v49 }
 0x5c3   : > { %v1291_v0 = vmul.f32 0.5, %v1290_v50 }
 0x5c5   : > { %v1292_v51 = vmul.f32 %v1291_v0, %v1279_v40 }
 0x5c7   : > { %v1293_v52 = vpack.c.bf16 %v1292_v51, %v1292_v51 }
 0x5c9   : > { %1705 = vmatmul.mubr.bf16.vlgmr.msra.gmra.mxu1 %v1293_v52 }
 0x689   : > { %v1399_v54 = vpop.f32.mrf.mxu1 }
 0x68a   : > { %v1400_v55 = vadd.f32 %v1558_v53, %v1399_v54 }
 0x68b   : > { %v1706_v56 = vpop.f32.mrf.mxu1 }
 0x68c   : > { %v1405_v57 = vadd.f32 %v1400_v55, %v1997_v11 }
 0x68d   : > { %v1402_v58 = vpop.f32.mrf.mxu1 }
 0x68e   : > { %v1406_v59 = vpack.c.bf16 %v1405_v57, %v1405_v57 }
 0x68f   : > { %v1707_v60 = vpop.f32.mrf.mxu1 }
 0x690   : > { %1408 = vst.msk [vmem:[%s537_s18] sm:$0xf] %vm1407_vm4, %v1406_v59 }
 0x691 PF: > { %s23_s27 = sadd.s32 1, %s1786_s27   ;;  %s2083_s25 = smov %s1782_s26 }
 0x692   : > { %p20_p5 = scmp.ge.s32.totalorder %s23_s27, 4   ;;  %s2084_s26 = smov %s2086_s28 }
 0x694   :  { %22 = sbr.rel (!%p20_p5) target bundleno = 2 (0x2), region = 111 }

// kernel: ast_forward.11
= control target key start
LH: loop header
LB: loop body
LE: loop exit
PB: predicated region body
PF: predicated region fallthrough
CT: control target
= control target key end

     0   :  { %vm34_vm0 = vcmask 254976   ;;  %s421_s0 = inlined_call_operand.vmem [shape: bf16[2,2,32], index: 0, kind: input, shape index: {}]   ;;  %s422_s1 = inlined_call_operand.vmem [shape: f32[1,32], index: 1, kind: input, shape index: {}]   ;;  %s423_s2 = inlined_call_operand.vmem [shape: f32[1,32], index: 2, kind: input, shape index: {}]   ;;  %s424_s3 = inlined_call_operand.vmem [shape: f32[1,32], index: 3, kind: input, shape index: {}]   ;;  %s425_s4 = inlined_call_operand.vmem [shape: f32[1,32], index: 4, kind: input, shape index: {}]   ;;  %s426_s5 = inlined_call_operand.vmem [shape: bf16[32,8], index: 5, kind: input, shape index: {}]   ;;  %s427_s6 = inlined_call_operand.vmem [shape: f32[1,8], index: 6, kind: input, shape index: {}]   ;;  %s428_s7 = inlined_call_operand.hbm [shape: f32[2,8], index: 7, kind: output, shape index: {}]  }
   0x1   :  { %v28_v0 = vld [vmem:[%s421_s0] sm:$0x1]  ;;  %v29_v1 = vld [vmem:[%s421_s0 + $0x1] sm:$0x1] }
   0x2   :  { %v30_v2 = vunpack.c.l.bf16 %v28_v0  ;;  %v31_v3 = vunpack.c.l.bf16 %v29_v1 }
   0x3   :  { %12 = vsyncpa [#allocation3], 0  ;;  %v281_v23 = vld [vmem:[%s422_s1] ss:$0 sm:$0xff]  ;;  %v94_v30 = vlaneseq  ;;  %vm102_vm1 = vcmask 1041409   ;;  %v307_v61 = vld [vmem:[%s426_s5 + $0x8] sm:$0xff]  }
   0x4   :  { %v35_v4 = vsel %vm34_vm0, %v30_v2, 0.0  ;;  %v38_v5 = vsel %vm34_vm0, %v31_v3, 0.0  ;;  %v282_v25 = vld [vmem:[%s423_s2] ss:$0 sm:$0xff]  ;;  %v337_v45 = vmov 269488144  }
   0x5   :  { %36 = vadd.xlane.f32.xlu0 %v35_v4  ;;  %v95_v35 = vshrl.u32 %v94_v30, 7  ;;  %v111_v46 = vunpack.c.l.s4 %v337_v45  ;;  %v338_v62 = vmov 0.0   ;;  %vm339_vm2 = vmmov 0   ;;  %v308_v63 = vld [vmem:[%s426_s5] sm:$0xff]   ;;  %s341_s5 = smov [#allocation2]  }
   0x6   :  { %294 = vmatprep.subr.bf16.mxu0 %v338_v62  ;;  %298 = vmatprep.mubr.msk.bf16.mxu0 %vm339_vm2, %v338_v62  ;;  %vm221_vm3 = vcmask 261120   ;;  %s273_s14 = sshll.u32 %s341_s5, 4  ;;  %vm265_vm4 = vcmask 58368   ;;  %s274_s14 = int_to_ptr.vmem [resolvable:$true] %s273_s14 }
   0x7   :  { %v96_v39 = vsub.s32 0, %v95_v35  ;;  %v112_v47 = vunpack.c.0.s8 %v111_v46  ;;  %295 = vmatpush3.bf16.msra.mxu0 %v307_v61  ;;  %s315_s15 = scalar_lea.vmem %s274_s14, 32  ;;  %p320_p1 = scmp.lt.s32.totalorder %s274_s14, %s274_s14 }
   0x8   :  { %296 = vmatprep.subr.bf16.mxu0 %v338_v62  ;;  %p316_p0 = scmp.ne.s32.totalorder %s274_s14, %s315_s15  ;;  %p321_p2 = scmp.lt.s32.totalorder %s315_s15, %s315_s15 }
   0x9   :  { %39 = vadd.xlane.f32.xlu0 %v38_v5  ;;  %v115_v48 = vsub.s32 %v112_v47, %v95_v35 }
   0xa   :  { %p322_p3 = por %p321_p2, %p320_p1 }
   0xb   :  { %297 = vmatpush3.bf16.msra.mxu0 %v308_v63 }
   0xc   :  { %p323_p4 = pnand %p322_p3, %p316_p0 }
  0x8e   :  { %v37_v6 = vpop.xlane.xlu0 %36 }
  0x8f   :  { %v42_v7 = vmul.f32 0.03125, %v37_v6 }
  0x91   :  { %v44_v8 = vsub.f32 %v30_v2, %v42_v7  ;;  %v285_v7 = vld [vmem:[%s424_s3] ss:$0 sm:$0xff] }
  0x92   :  { %v40_v9 = vpop.xlane.xlu0 %39 }
  0x93   :  { %v43_v10 = vmul.f32 0.03125, %v40_v9  ;;  %v46_v11 = vmul.f32 %v44_v8, %v44_v8 }
  0x95   :  { %v45_v12 = vsub.f32 %v31_v3, %v43_v10  ;;  %v48_v13 = vsel %vm34_vm0, %v46_v11, 0.0  ;;  %v340_v3 = vmov 1983009808  }
  0x96   :  { %49 = vadd.xlane.f32.xlu1 %v48_v13  ;;  %v161_v4 = vunpack.c.l.s4 %v340_v3 }
  0x97   :  { %v47_v14 = vmul.f32 %v45_v12, %v45_v12 }
  0x98   :  { %v162_v5 = vunpack.c.0.s8 %v161_v4 }
  0x99   :  { %v51_v15 = vsel %vm34_vm0, %v47_v14, 0.0 }
  0x9a   :  { %52 = vadd.xlane.f32.xlu1 %v51_v15  ;;  %v165_v6 = vsub.s32 %v162_v5, %v95_v35 }
  0x9c   :  { %v166_v9 = vrot.slane %v285_v7, %v165_v6 }
  0x9e   :  { %v167_v15 = vrot.slane %v166_v9, 1 }
 0x11f   :  { %v50_v16 = vpop.xlane.xlu1 %49 }
 0x120   :  { %v54_v17 = vmul.f32 0.03125, %v50_v16 }
 0x122   :  { %v56_v18 = vadd.f32 1e-06, %v54_v17 }
 0x123   :  { %v53_v19 = vpop.xlane.xlu1 %52 }
 0x124   :  { %309 = vrsqrt.f32 %v56_v18  ;;  %v55_v20 = vmul.f32 0.03125, %v53_v19 }
 0x126   :  { %v57_v21 = vadd.f32 1e-06, %v55_v20 }
 0x128   :  { %311 = vrsqrt.f32 %v57_v21 }
 0x131   :  { %v310_v22 = vpop.eup %309 }
 0x132   :  { %v60_v24 = vmul.f32 %v310_v22, %v44_v8  ;;  %v286_v8 = vld [vmem:[%s425_s4] ss:$0 sm:$0xff] }
 0x134   :  { %v68_v26 = vmul.f32 %v281_v23, %v60_v24 }
 0x135   :  { %v312_v27 = vpop.eup %311 }
 0x136   :  { %v61_v28 = vmul.f32 %v312_v27, %v45_v12  ;;  %v76_v29 = vadd.f32 %v282_v25, %v68_v26  ;;  %v183_v12 = vrot.slane %v286_v8, %v165_v6 }
 0x138   :  { %v69_v31 = vmul.f32 %v281_v23, %v61_v28  ;;  %v283_v32 = vrot.slane %v76_v29, 9  ;;  %v184_v18 = vrot.slane %v183_v12, 1 }
 0x13a   :  { %v77_v33 = vadd.f32 %v282_v25, %v69_v31  ;;  %v86_v34 = vadd.f32 %v283_v32, %v76_v29  ;;  %v287_v29 = vld [vmem:[%s427_s6] ss:$0 sm:$0xff] }
 0x13c   :  { %v284_v36 = vrot.slane %v77_v33, 9  ;;  %v88_v38 = vmul.f32 0.5, %v86_v34 }
 0x13e   :  { %v87_v37 = vadd.f32 %v284_v36, %v77_v33  ;;  %v97_v41 = vrot.slane %v88_v38, %v96_v39 }
 0x140   :  { %v89_v40 = vmul.f32 0.5, %v87_v37 }
 0x142   :  { %v101_v42 = vrot.slane %v89_v40, %v96_v39 }
 0x144   :  { %v103_v43 = vsel %vm102_vm1, %v101_v42, %v97_v41 }
 0x145   :  { %v105_v44 = vsel %vm34_vm0, %v103_v43, 0.0 }
 0x146   :  { %106 = vadd.xlane.f32.xlu0 %v105_v44 }
 0x1cf   :  { %v107_v49 = vpop.xlane.xlu0 %106 }
 0x1d0   :  { %v108_v50 = vmul.f32 0.03125, %v107_v49 }
 0x1d2   :  { %v116_v51 = vrot.slane %v108_v50, %v115_v48 }
 0x1d4   :  { %v117_v52 = vrot.slane %v116_v51, 1  ;;  %v120_v53 = vsub.f32 %v88_v38, %v116_v51 }
 0x1d6   :  { %v121_v54 = vsub.f32 %v89_v40, %v117_v52  ;;  %v122_v55 = vmul.f32 %v120_v53, %v120_v53 }
 0x1d8   :  { %v123_v56 = vmul.f32 %v121_v54, %v121_v54  ;;  %v129_v57 = vrot.slane %v122_v55, %v96_v39 }
 0x1da   :  { %v133_v58 = vrot.slane %v123_v56, %v96_v39 }
 0x1dc   :  { %v134_v59 = vsel %vm102_vm1, %v133_v58, %v129_v57 }
 0x1dd   :  { %v136_v60 = vsel %vm34_vm0, %v134_v59, 0.0 }
 0x1de   :  { %137 = vadd.xlane.f32.xlu1 %v136_v60 }
 0x267   :  { %v138_v0 = vpop.xlane.xlu1 %137 }
 0x268   :  { %v139_v1 = vmul.f32 0.03125, %v138_v0 }
 0x26a   :  { %v140_v2 = vadd.f32 1e-05, %v139_v1 }
 0x26c   :  { %313 = vrsqrt.f32 %v140_v2 }
 0x279   :  { %v314_v10 = vpop.eup %313 }
 0x27a   :  { %v149_v11 = vrot.slane %v314_v10, %v115_v48 }
 0x27c   :  { %v150_v13 = vrot.slane %v149_v11, 1  ;;  %v153_v14 = vmul.f32 %v149_v11, %v120_v53 }
 0x27e   :  { %v154_v16 = vmul.f32 %v150_v13, %v121_v54  ;;  %v170_v17 = vmul.f32 %v166_v9, %v153_v14 }
 0x280   :  { %v171_v19 = vmul.f32 %v167_v15, %v154_v16  ;;  %v187_v20 = vadd.f32 %v183_v12, %v170_v17 }
 0x282   :  { %v188_v21 = vadd.f32 %v184_v18, %v171_v19  ;;  %v189_v22 = vpack.c.bf16 %v187_v20, %v187_v20 }
 0x284   :  { %v190_v23 = vpack.c.bf16 %v188_v21, %v188_v21  ;;  %v204_v25 = vunpack.c.l.b16 %v189_v22 }
 0x286   :  { %v205_v24 = vunpack.c.l.b16 %v190_v23 }
 0x288   :  { %v206_v26 = vrot.slane %v205_v24, 7 }
 0x28a   :  { %v207_v27 = vsel %vm102_vm1, %v206_v26, %v204_v25 }
 0x28b   :  { %v208_v28 = vpack.c.b16 %v207_v27, %v207_v27 }
 0x28d   :  { %299 = vmatmul.mubr.msk.bf16.vlgmr.msra.gmra.mxu0 %vm221_vm3, %v208_v28 }
 0x34d   :  { %v259_v30 = vpop.f32.mrf.mxu0 }
 0x34e   :  { %v260_v31 = vadd.f32 %v287_v29, %v259_v30 }
 0x34f   :  { %v300_v32 = vpop.f32.mrf.mxu0 }
 0x350   :  { %266 = vst.msk [vmem:[#allocation2] sm:$0x3] %vm265_vm4, %v260_v31 }
 0x351   :  { %v262_v33 = vpop.f32.mrf.mxu0 }
 0x352   :  { %326 = shalt.err (!%p323_p4)
}
 0x353   :  { %276 = dma.vmem_to_hbm [thread:$0]  %s274_s14, 32, %s428_s7, [#allocation3]   ;;  %v301_v34 = vpop.f32.mrf.mxu0 }
 0x354   :  { %335 = dma.done.wait [#allocation3], 32  }
 0x355   :  { %336 = vsyncadd [#allocation3], 4294967264 }
 0x356   :  { %280 = vsyncpa [#allocation3], 1 }

</bundles_post_ra>
